<compile_context>
chip_gen: v7x
topology: tpu7x:2x2x1
jax: 0.10.0
libtpu: 0.0.40
codegen_flags: <defaults>
</compile_context>

<pallas_src>
import numpy as np
import jax
import jax.numpy as jnp
from jax import lax
from jax.experimental import pallas as pl
from jax.experimental.pallas import tpu as pltpu

C = 10            # in/out channels fixed by BatchNorm2d(10) + identity shortcut
CP = 16           # channels padded to 2 full sublane tiles for aligned im2col
KH = KW = 3
EPS = 1e-5
TAPS = [(dy - 1, dx - 1) for dy in range(KH) for dx in range(KW)]   # k = dy*3 + dx


def _border_masks(H, W):
    """(9, 1, 1, H*W) 0/1 masks: which output pixels see a valid input pixel per tap."""
    m = np.zeros((KH * KW, 1, 1, H, W), np.float32)
    for k, (oy, ox) in enumerate(TAPS):
        m[k, 0, 0, max(0, -oy):min(H, H - oy), max(0, -ox):min(W, W - ox)] = 1.0
    return m.reshape(KH * KW, 1, 1, H * W)


def _make_kernel(N, H, W):
    HW = H * W
    inv_cnt = 1.0 / float(N * HW)

    def kernel(x_ref, mask_ref, w1_ref, g1_ref, bt1_ref,
               w2_ref, g2_ref, bt2_ref, out_ref):
        x = x_ref[...]                           # (N, CP, HW) f32, spatial on lanes
        masks = mask_ref[...]                    # (9, 1, 1, HW) 0/1 border masks

        def im2col(a):
            # Patch matrix (N, 9*CP, HW): tap-major, channel-minor, spatial on lanes.
            cols = []
            for k, (oy, ox) in enumerate(TAPS):
                s = oy * W + ox                  # flattened source offset of this tap
                rolled = a if s == 0 else pltpu.roll(a, (-s) % HW, axis=2)
                cols.append(rolled * masks[k])   # zero the out-of-image taps
            return jnp.concatenate(cols, axis=1)            # sublane-aligned (CP % 8 == 0)

        def conv3x3(a, w_ref):
            # One (CP, 9*CP) x (9*CP, HW) MXU matmul per image, DEFAULT precision.
            p = im2col(a)
            wm = w_ref[...]                                  # (CP, 9*CP)
            return jnp.stack(
                [jnp.dot(wm, p[n], preferred_element_type=jnp.float32)
                 for n in range(N)],
                axis=0)                                      # (N, CP, HW)

        def batchnorm(h, g_ref, bt_ref, relu):
            # Training-mode BN, single statistics pass (E[x], E[x^2]) + fused affine.
            s1 = jnp.sum(jnp.sum(h, axis=2, keepdims=True), axis=0, keepdims=True)
            s2 = jnp.sum(jnp.sum(h * h, axis=2, keepdims=True), axis=0, keepdims=True)
            mean = s1 * inv_cnt                              # (1, CP, 1)
            var = s2 * inv_cnt - mean * mean
            scale = g_ref[...][None] * lax.rsqrt(var + EPS)  # (1, CP, 1)
            shift = bt_ref[...][None] - mean * scale
            y = h * scale + shift
            return jnp.maximum(y, 0.0) if relu else y

        h = batchnorm(conv3x3(x, w1_ref), g1_ref, bt1_ref, relu=True)
        h = batchnorm(conv3x3(h, w2_ref), g2_ref, bt2_ref, relu=False)
        out_ref[...] = jnp.maximum(h + x, 0.0)               # identity shortcut + ReLU

    return kernel


def _pack_conv_weight(w):
    """torch (Cout, Cin, 3, 3) -> (CP, 9*CP), tap-major / channel-minor, zero-padded."""
    w_t = jnp.transpose(w, (0, 2, 3, 1))                               # (Cout, ky, kx, Cin)
    w_t = jnp.pad(w_t, ((0, CP - C), (0, 0), (0, 0), (0, CP - C)))
    return w_t.reshape(CP, KH * KW * CP)


def _pack_bn_param(v):
    """(C,) -> (CP, 1), zero-padded (zero gamma keeps padded channels exactly zero)."""
    return jnp.pad(v, (0, CP - C)).reshape(CP, 1)


@jax.jit
def residual_block(x_nchw, params):
    """NCHW in / NCHW out; the whole conv-BN-ReLU block runs in one Pallas kernel."""
    w1, b1, g1, bt1, w2, b2, g2, bt2 = params
    del b1, b2   # bias before training-mode BN is cancelled exactly by the mean subtraction
    N, cin, H, W = x_nchw.shape
    assert cin == C, "BatchNorm2d(10) / identity shortcut force 10 channels"
    HW = H * W

    # NCHW -> (N, C, H*W) is a free reshape (no transpose); pad channels 10 -> 16.
    x3 = jnp.pad(x_nchw.astype(jnp.float32).reshape(N, C, HW),
                 ((0, 0), (0, CP - C), (0, 0)))

    masks = jnp.asarray(_border_masks(H, W))
    w1m, w2m = _pack_conv_weight(w1), _pack_conv_weight(w2)
    g1p, bt1p = _pack_bn_param(g1), _pack_bn_param(bt1)
    g2p, bt2p = _pack_bn_param(g2), _pack_bn_param(bt2)

    vmem = pl.BlockSpec(memory_space=pltpu.MemorySpace.VMEM)
    out = pl.pallas_call(
        _make_kernel(N, H, W),
        out_shape=jax.ShapeDtypeStruct((N, CP, HW), jnp.float32),
        in_specs=[vmem] * 8,
        out_specs=vmem,
    )(x3, masks, w1m, g1p, bt1p, w2m, g2p, bt2p)

    return out[:, :C, :].reshape(N, C, H, W)


def init_params(key):
    """Deterministic parameters with PyTorch-default shapes/scales (torch layouts)."""
    k0, k1, k2, k3 = jax.random.split(key, 4)
    bound = 1.0 / float(np.sqrt(C * KH * KW))
    w1 = jax.random.uniform(k0, (C, C, KH, KW), jnp.float32, -bound, bound)
    b1 = jax.random.uniform(k1, (C,), jnp.float32, -bound, bound)
    w2 = jax.random.uniform(k2, (C, C, KH, KW), jnp.float32, -bound, bound)
    b2 = jax.random.uniform(k3, (C,), jnp.float32, -bound, bound)
    g1, bt1 = jnp.ones((C,), jnp.float32), jnp.zeros((C,), jnp.float32)
    g2, bt2 = jnp.ones((C,), jnp.float32), jnp.zeros((C,), jnp.float32)
    return (w1, b1, g1, bt1, w2, b2, g2, bt2)


def reference(x_nchw, params):
    """Pure-JAX NCHW reference of the same forward pass (keeps the conv biases)."""
    w1, b1, g1, bt1, w2, b2, g2, bt2 = params
    x = x_nchw.astype(jnp.float32)

    def conv(inp, w, b):
        y = lax.conv_general_dilated(inp, w, (1, 1), 'SAME',
                                     dimension_numbers=('NCHW', 'OIHW', 'NCHW'))
        return y + b.reshape(1, C, 1, 1)

    def bn(h, g, bt):
        mean = jnp.mean(h, axis=(0, 2, 3), keepdims=True)
        var = jnp.mean((h - mean) ** 2, axis=(0, 2, 3), keepdims=True)
        return ((h - mean) * lax.rsqrt(var + EPS) * g.reshape(1, C, 1, 1)
                + bt.reshape(1, C, 1, 1))

    h = jnp.maximum(bn(conv(x, w1, b1), g1, bt1), 0.0)
    h2 = bn(conv(h, w2, b2), g2, bt2)
    return jnp.maximum(h2 + x, 0.0)


if __name__ == "__main__":
    key = jax.random.PRNGKey(0)
    kx, kp = jax.random.split(key)
    # channels must be 10: BatchNorm2d(10) is hard-coded and the shortcut is identity
    x = jax.random.normal(kx, (2, C, 16, 16), dtype=jnp.float32)   # NCHW like PyTorch
    params = init_params(kp)

    out = jax.block_until_ready(residual_block(x, params))
    ref = jax.block_until_ready(reference(x, params))

    assert out.shape == x.shape, (out.shape, x.shape)
    max_err = float(jnp.max(jnp.abs(out - ref)))
    # DEFAULT (single bf16 pass) MXU precision in the kernel vs XLA's conv algorithm:
    # allow a few e-3 of drift; any structural bug would be orders of magnitude larger.
    assert jnp.allclose(out, ref, atol=1e-2, rtol=1e-2), max_err
    print("KERNEL_OK")
</pallas_src>

<mosaic_0001>
module attributes {stable_mosaic.version = 11 : i64} {
  func.func @kernel(%arg0: memref<2x16x256xf32, #tpu.memory_space<vmem>>, %arg1: memref<9x1x1x256xf32, #tpu.memory_space<vmem>>, %arg2: memref<16x144xf32, #tpu.memory_space<vmem>>, %arg3: memref<16x1xf32, #tpu.memory_space<vmem>>, %arg4: memref<16x1xf32, #tpu.memory_space<vmem>>, %arg5: memref<16x144xf32, #tpu.memory_space<vmem>>, %arg6: memref<16x1xf32, #tpu.memory_space<vmem>>, %arg7: memref<16x1xf32, #tpu.memory_space<vmem>>, %arg8: memref<2x16x256xf32, #tpu.memory_space<vmem>>) attributes {dimension_semantics = [], scalar_prefetch = 0 : i64, scratch_operands = 0 : i64, tpu.core_type = #tpu.core_type<tc>} {
    %c0 = arith.constant 0 : index
    %c0_0 = arith.constant 0 : index
    %c0_1 = arith.constant 0 : index
    %0 = vector.load %arg0[%c0, %c0_0, %c0_1] : memref<2x16x256xf32, #tpu.memory_space<vmem>>, vector<2x16x256xf32>
    %c0_2 = arith.constant 0 : index
    %c0_3 = arith.constant 0 : index
    %c0_4 = arith.constant 0 : index
    %c0_5 = arith.constant 0 : index
    %1 = vector.load %arg1[%c0_2, %c0_3, %c0_4, %c0_5] : memref<9x1x1x256xf32, #tpu.memory_space<vmem>>, vector<9x1x1x256xf32>
    %c17_i32 = arith.constant 17 : i32
    %2 = tpu.dynamic_rotate %0 by %c17_i32 dim 2 : vector<2x16x256xf32>, i32 -> vector<2x16x256xf32>
    %3 = vector.extract_strided_slice %1 {offsets = [0, 0, 0, 0], sizes = [1, 1, 1, 256], strides = [1, 1, 1, 1]} : vector<9x1x1x256xf32> to vector<1x1x1x256xf32>
    %4 = vector.shape_cast %3 : vector<1x1x1x256xf32> to vector<1x1x256xf32>
    %5 = vector.broadcast %4 : vector<1x1x256xf32> to vector<2x16x256xf32>
    %6 = arith.mulf %2, %5 : vector<2x16x256xf32>
    %c16_i32 = arith.constant 16 : i32
    %7 = tpu.dynamic_rotate %0 by %c16_i32 dim 2 : vector<2x16x256xf32>, i32 -> vector<2x16x256xf32>
    %8 = vector.extract_strided_slice %1 {offsets = [1, 0, 0, 0], sizes = [1, 1, 1, 256], strides = [1, 1, 1, 1]} : vector<9x1x1x256xf32> to vector<1x1x1x256xf32>
    %9 = vector.shape_cast %8 : vector<1x1x1x256xf32> to vector<1x1x256xf32>
    %10 = vector.broadcast %9 : vector<1x1x256xf32> to vector<2x16x256xf32>
    %11 = arith.mulf %7, %10 : vector<2x16x256xf32>
    %c15_i32 = arith.constant 15 : i32
    %12 = tpu.dynamic_rotate %0 by %c15_i32 dim 2 : vector<2x16x256xf32>, i32 -> vector<2x16x256xf32>
    %13 = vector.extract_strided_slice %1 {offsets = [2, 0, 0, 0], sizes = [1, 1, 1, 256], strides = [1, 1, 1, 1]} : vector<9x1x1x256xf32> to vector<1x1x1x256xf32>
    %14 = vector.shape_cast %13 : vector<1x1x1x256xf32> to vector<1x1x256xf32>
    %15 = vector.broadcast %14 : vector<1x1x256xf32> to vector<2x16x256xf32>
    %16 = arith.mulf %12, %15 : vector<2x16x256xf32>
    %c1_i32 = arith.constant 1 : i32
    %17 = tpu.dynamic_rotate %0 by %c1_i32 dim 2 : vector<2x16x256xf32>, i32 -> vector<2x16x256xf32>
    %18 = vector.extract_strided_slice %1 {offsets = [3, 0, 0, 0], sizes = [1, 1, 1, 256], strides = [1, 1, 1, 1]} : vector<9x1x1x256xf32> to vector<1x1x1x256xf32>
    %19 = vector.shape_cast %18 : vector<1x1x1x256xf32> to vector<1x1x256xf32>
    %20 = vector.broadcast %19 : vector<1x1x256xf32> to vector<2x16x256xf32>
    %21 = arith.mulf %17, %20 : vector<2x16x256xf32>
    %22 = vector.extract_strided_slice %1 {offsets = [4, 0, 0, 0], sizes = [1, 1, 1, 256], strides = [1, 1, 1, 1]} : vector<9x1x1x256xf32> to vector<1x1x1x256xf32>
    %23 = vector.shape_cast %22 : vector<1x1x1x256xf32> to vector<1x1x256xf32>
    %24 = vector.broadcast %23 : vector<1x1x256xf32> to vector<2x16x256xf32>
    %25 = arith.mulf %0, %24 : vector<2x16x256xf32>
    %c255_i32 = arith.constant 255 : i32
    %26 = tpu.dynamic_rotate %0 by %c255_i32 dim 2 : vector<2x16x256xf32>, i32 -> vector<2x16x256xf32>
    %27 = vector.extract_strided_slice %1 {offsets = [5, 0, 0, 0], sizes = [1, 1, 1, 256], strides = [1, 1, 1, 1]} : vector<9x1x1x256xf32> to vector<1x1x1x256xf32>
    %28 = vector.shape_cast %27 : vector<1x1x1x256xf32> to vector<1x1x256xf32>
    %29 = vector.broadcast %28 : vector<1x1x256xf32> to vector<2x16x256xf32>
    %30 = arith.mulf %26, %29 : vector<2x16x256xf32>
    %c241_i32 = arith.constant 241 : i32
    %31 = tpu.dynamic_rotate %0 by %c241_i32 dim 2 : vector<2x16x256xf32>, i32 -> vector<2x16x256xf32>
    %32 = vector.extract_strided_slice %1 {offsets = [6, 0, 0, 0], sizes = [1, 1, 1, 256], strides = [1, 1, 1, 1]} : vector<9x1x1x256xf32> to vector<1x1x1x256xf32>
    %33 = vector.shape_cast %32 : vector<1x1x1x256xf32> to vector<1x1x256xf32>
    %34 = vector.broadcast %33 : vector<1x1x256xf32> to vector<2x16x256xf32>
    %35 = arith.mulf %31, %34 : vector<2x16x256xf32>
    %c240_i32 = arith.constant 240 : i32
    %36 = tpu.dynamic_rotate %0 by %c240_i32 dim 2 : vector<2x16x256xf32>, i32 -> vector<2x16x256xf32>
    %37 = vector.extract_strided_slice %1 {offsets = [7, 0, 0, 0], sizes = [1, 1, 1, 256], strides = [1, 1, 1, 1]} : vector<9x1x1x256xf32> to vector<1x1x1x256xf32>
    %38 = vector.shape_cast %37 : vector<1x1x1x256xf32> to vector<1x1x256xf32>
    %39 = vector.broadcast %38 : vector<1x1x256xf32> to vector<2x16x256xf32>
    %40 = arith.mulf %36, %39 : vector<2x16x256xf32>
    %c239_i32 = arith.constant 239 : i32
    %41 = tpu.dynamic_rotate %0 by %c239_i32 dim 2 : vector<2x16x256xf32>, i32 -> vector<2x16x256xf32>
    %42 = vector.extract_strided_slice %1 {offsets = [8, 0, 0, 0], sizes = [1, 1, 1, 256], strides = [1, 1, 1, 1]} : vector<9x1x1x256xf32> to vector<1x1x1x256xf32>
    %43 = vector.shape_cast %42 : vector<1x1x1x256xf32> to vector<1x1x256xf32>
    %44 = vector.broadcast %43 : vector<1x1x256xf32> to vector<2x16x256xf32>
    %45 = arith.mulf %41, %44 : vector<2x16x256xf32>
    %46 = tpu.concatenate %6, %11, %16, %21, %25, %30, %35, %40, %45 in 1 : vector<2x16x256xf32>, vector<2x16x256xf32>, vector<2x16x256xf32>, vector<2x16x256xf32>, vector<2x16x256xf32>, vector<2x16x256xf32>, vector<2x16x256xf32>, vector<2x16x256xf32>, vector<2x16x256xf32> -> vector<2x144x256xf32>
    %c0_6 = arith.constant 0 : index
    %c0_7 = arith.constant 0 : index
    %47 = vector.load %arg2[%c0_6, %c0_7] : memref<16x144xf32, #tpu.memory_space<vmem>>, vector<16x144xf32>
    %48 = vector.extract_strided_slice %46 {offsets = [0, 0, 0], sizes = [1, 144, 256], strides = [1, 1, 1]} : vector<2x144x256xf32> to vector<1x144x256xf32>
    %49 = vector.shape_cast %48 : vector<1x144x256xf32> to vector<144x256xf32>
    %cst = arith.constant dense<0.000000e+00> : vector<16x256xf32>
    %50 = tpu.matmul %47, %49, %cst {dimension_numbers = #tpu.dot_dimension_numbers<[1], [0], [0], [1], [0, 0, 1, 1], [], []>} : vector<16x144xf32>, vector<144x256xf32>, vector<16x256xf32> -> vector<16x256xf32>
    %51 = vector.extract_strided_slice %46 {offsets = [1, 0, 0], sizes = [1, 144, 256], strides = [1, 1, 1]} : vector<2x144x256xf32> to vector<1x144x256xf32>
    %52 = vector.shape_cast %51 : vector<1x144x256xf32> to vector<144x256xf32>
    %cst_8 = arith.constant dense<0.000000e+00> : vector<16x256xf32>
    %53 = tpu.matmul %47, %52, %cst_8 {dimension_numbers = #tpu.dot_dimension_numbers<[1], [0], [0], [1], [0, 0, 1, 1], [], []>} : vector<16x144xf32>, vector<144x256xf32>, vector<16x256xf32> -> vector<16x256xf32>
    %54 = vector.shape_cast %50 : vector<16x256xf32> to vector<1x16x256xf32>
    %55 = vector.shape_cast %53 : vector<16x256xf32> to vector<1x16x256xf32>
    %56 = tpu.concatenate %54, %55 in 0 : vector<1x16x256xf32>, vector<1x16x256xf32> -> vector<2x16x256xf32>
    %cst_9 = arith.constant dense<0.000000e+00> : vector<2x16xf32>
    %57 = vector.multi_reduction <add>, %56, %cst_9 [2] : vector<2x16x256xf32> to vector<2x16xf32>
    %58 = vector.shape_cast %57 : vector<2x16xf32> to vector<2x16x1xf32>
    %cst_10 = arith.constant dense<0.000000e+00> : vector<16x1xf32>
    %59 = vector.multi_reduction <add>, %58, %cst_10 [0] : vector<2x16x1xf32> to vector<16x1xf32>
    %60 = vector.shape_cast %59 : vector<16x1xf32> to vector<1x16x1xf32>
    %61 = arith.mulf %56, %56 : vector<2x16x256xf32>
    %cst_11 = arith.constant dense<0.000000e+00> : vector<2x16xf32>
    %62 = vector.multi_reduction <add>, %61, %cst_11 [2] : vector<2x16x256xf32> to vector<2x16xf32>
    %63 = vector.shape_cast %62 : vector<2x16xf32> to vector<2x16x1xf32>
    %cst_12 = arith.constant dense<0.000000e+00> : vector<16x1xf32>
    %64 = vector.multi_reduction <add>, %63, %cst_12 [0] : vector<2x16x1xf32> to vector<16x1xf32>
    %65 = vector.shape_cast %64 : vector<16x1xf32> to vector<1x16x1xf32>
    %cst_13 = arith.constant 0.001953125 : f32
    %66 = vector.broadcast %cst_13 : f32 to vector<1x16x1xf32>
    %67 = arith.mulf %60, %66 : vector<1x16x1xf32>
    %cst_14 = arith.constant 0.001953125 : f32
    %68 = vector.broadcast %cst_14 : f32 to vector<1x16x1xf32>
    %69 = arith.mulf %65, %68 : vector<1x16x1xf32>
    %70 = arith.mulf %67, %67 : vector<1x16x1xf32>
    %71 = arith.subf %69, %70 : vector<1x16x1xf32>
    %c0_15 = arith.constant 0 : index
    %c0_16 = arith.constant 0 : index
    %72 = vector.load %arg3[%c0_15, %c0_16] : memref<16x1xf32, #tpu.memory_space<vmem>>, vector<16x1xf32>
    %73 = vector.shape_cast %72 : vector<16x1xf32> to vector<1x16x1xf32>
    %cst_17 = arith.constant 9.99999974E-6 : f32
    %74 = vector.broadcast %cst_17 : f32 to vector<1x16x1xf32>
    %75 = arith.addf %71, %74 : vector<1x16x1xf32>
    %76 = math.rsqrt %75 : vector<1x16x1xf32>
    %77 = arith.mulf %73, %76 : vector<1x16x1xf32>
    %c0_18 = arith.constant 0 : index
    %c0_19 = arith.constant 0 : index
    %78 = vector.load %arg4[%c0_18, %c0_19] : memref<16x1xf32, #tpu.memory_space<vmem>>, vector<16x1xf32>
    %79 = vector.shape_cast %78 : vector<16x1xf32> to vector<1x16x1xf32>
    %80 = arith.mulf %67, %77 : vector<1x16x1xf32>
    %81 = arith.subf %79, %80 : vector<1x16x1xf32>
    %82 = vector.broadcast %77 : vector<1x16x1xf32> to vector<2x16x256xf32>
    %83 = arith.mulf %56, %82 : vector<2x16x256xf32>
    %84 = vector.broadcast %81 : vector<1x16x1xf32> to vector<2x16x256xf32>
    %85 = arith.addf %83, %84 : vector<2x16x256xf32>
    %cst_20 = arith.constant 0.000000e+00 : f32
    %86 = vector.broadcast %cst_20 : f32 to vector<2x16x256xf32>
    %87 = arith.maximumf %85, %86 : vector<2x16x256xf32>
    %c17_i32_21 = arith.constant 17 : i32
    %88 = tpu.dynamic_rotate %87 by %c17_i32_21 dim 2 : vector<2x16x256xf32>, i32 -> vector<2x16x256xf32>
    %89 = vector.extract_strided_slice %1 {offsets = [0, 0, 0, 0], sizes = [1, 1, 1, 256], strides = [1, 1, 1, 1]} : vector<9x1x1x256xf32> to vector<1x1x1x256xf32>
    %90 = vector.shape_cast %89 : vector<1x1x1x256xf32> to vector<1x1x256xf32>
    %91 = vector.broadcast %90 : vector<1x1x256xf32> to vector<2x16x256xf32>
    %92 = arith.mulf %88, %91 : vector<2x16x256xf32>
    %c16_i32_22 = arith.constant 16 : i32
    %93 = tpu.dynamic_rotate %87 by %c16_i32_22 dim 2 : vector<2x16x256xf32>, i32 -> vector<2x16x256xf32>
    %94 = vector.extract_strided_slice %1 {offsets = [1, 0, 0, 0], sizes = [1, 1, 1, 256], strides = [1, 1, 1, 1]} : vector<9x1x1x256xf32> to vector<1x1x1x256xf32>
    %95 = vector.shape_cast %94 : vector<1x1x1x256xf32> to vector<1x1x256xf32>
    %96 = vector.broadcast %95 : vector<1x1x256xf32> to vector<2x16x256xf32>
    %97 = arith.mulf %93, %96 : vector<2x16x256xf32>
    %c15_i32_23 = arith.constant 15 : i32
    %98 = tpu.dynamic_rotate %87 by %c15_i32_23 dim 2 : vector<2x16x256xf32>, i32 -> vector<2x16x256xf32>
    %99 = vector.extract_strided_slice %1 {offsets = [2, 0, 0, 0], sizes = [1, 1, 1, 256], strides = [1, 1, 1, 1]} : vector<9x1x1x256xf32> to vector<1x1x1x256xf32>
    %100 = vector.shape_cast %99 : vector<1x1x1x256xf32> to vector<1x1x256xf32>
    %101 = vector.broadcast %100 : vector<1x1x256xf32> to vector<2x16x256xf32>
    %102 = arith.mulf %98, %101 : vector<2x16x256xf32>
    %c1_i32_24 = arith.constant 1 : i32
    %103 = tpu.dynamic_rotate %87 by %c1_i32_24 dim 2 : vector<2x16x256xf32>, i32 -> vector<2x16x256xf32>
    %104 = vector.extract_strided_slice %1 {offsets = [3, 0, 0, 0], sizes = [1, 1, 1, 256], strides = [1, 1, 1, 1]} : vector<9x1x1x256xf32> to vector<1x1x1x256xf32>
    %105 = vector.shape_cast %104 : vector<1x1x1x256xf32> to vector<1x1x256xf32>
    %106 = vector.broadcast %105 : vector<1x1x256xf32> to vector<2x16x256xf32>
    %107 = arith.mulf %103, %106 : vector<2x16x256xf32>
    %108 = vector.extract_strided_slice %1 {offsets = [4, 0, 0, 0], sizes = [1, 1, 1, 256], strides = [1, 1, 1, 1]} : vector<9x1x1x256xf32> to vector<1x1x1x256xf32>
    %109 = vector.shape_cast %108 : vector<1x1x1x256xf32> to vector<1x1x256xf32>
    %110 = vector.broadcast %109 : vector<1x1x256xf32> to vector<2x16x256xf32>
    %111 = arith.mulf %87, %110 : vector<2x16x256xf32>
    %c255_i32_25 = arith.constant 255 : i32
    %112 = tpu.dynamic_rotate %87 by %c255_i32_25 dim 2 : vector<2x16x256xf32>, i32 -> vector<2x16x256xf32>
    %113 = vector.extract_strided_slice %1 {offsets = [5, 0, 0, 0], sizes = [1, 1, 1, 256], strides = [1, 1, 1, 1]} : vector<9x1x1x256xf32> to vector<1x1x1x256xf32>
    %114 = vector.shape_cast %113 : vector<1x1x1x256xf32> to vector<1x1x256xf32>
    %115 = vector.broadcast %114 : vector<1x1x256xf32> to vector<2x16x256xf32>
    %116 = arith.mulf %112, %115 : vector<2x16x256xf32>
    %c241_i32_26 = arith.constant 241 : i32
    %117 = tpu.dynamic_rotate %87 by %c241_i32_26 dim 2 : vector<2x16x256xf32>, i32 -> vector<2x16x256xf32>
    %118 = vector.extract_strided_slice %1 {offsets = [6, 0, 0, 0], sizes = [1, 1, 1, 256], strides = [1, 1, 1, 1]} : vector<9x1x1x256xf32> to vector<1x1x1x256xf32>
    %119 = vector.shape_cast %118 : vector<1x1x1x256xf32> to vector<1x1x256xf32>
    %120 = vector.broadcast %119 : vector<1x1x256xf32> to vector<2x16x256xf32>
    %121 = arith.mulf %117, %120 : vector<2x16x256xf32>
    %c240_i32_27 = arith.constant 240 : i32
    %122 = tpu.dynamic_rotate %87 by %c240_i32_27 dim 2 : vector<2x16x256xf32>, i32 -> vector<2x16x256xf32>
    %123 = vector.extract_strided_slice %1 {offsets = [7, 0, 0, 0], sizes = [1, 1, 1, 256], strides = [1, 1, 1, 1]} : vector<9x1x1x256xf32> to vector<1x1x1x256xf32>
    %124 = vector.shape_cast %123 : vector<1x1x1x256xf32> to vector<1x1x256xf32>
    %125 = vector.broadcast %124 : vector<1x1x256xf32> to vector<2x16x256xf32>
    %126 = arith.mulf %122, %125 : vector<2x16x256xf32>
    %c239_i32_28 = arith.constant 239 : i32
    %127 = tpu.dynamic_rotate %87 by %c239_i32_28 dim 2 : vector<2x16x256xf32>, i32 -> vector<2x16x256xf32>
    %128 = vector.extract_strided_slice %1 {offsets = [8, 0, 0, 0], sizes = [1, 1, 1, 256], strides = [1, 1, 1, 1]} : vector<9x1x1x256xf32> to vector<1x1x1x256xf32>
    %129 = vector.shape_cast %128 : vector<1x1x1x256xf32> to vector<1x1x256xf32>
    %130 = vector.broadcast %129 : vector<1x1x256xf32> to vector<2x16x256xf32>
    %131 = arith.mulf %127, %130 : vector<2x16x256xf32>
    %132 = tpu.concatenate %92, %97, %102, %107, %111, %116, %121, %126, %131 in 1 : vector<2x16x256xf32>, vector<2x16x256xf32>, vector<2x16x256xf32>, vector<2x16x256xf32>, vector<2x16x256xf32>, vector<2x16x256xf32>, vector<2x16x256xf32>, vector<2x16x256xf32>, vector<2x16x256xf32> -> vector<2x144x256xf32>
    %c0_29 = arith.constant 0 : index
    %c0_30 = arith.constant 0 : index
    %133 = vector.load %arg5[%c0_29, %c0_30] : memref<16x144xf32, #tpu.memory_space<vmem>>, vector<16x144xf32>
    %134 = vector.extract_strided_slice %132 {offsets = [0, 0, 0], sizes = [1, 144, 256], strides = [1, 1, 1]} : vector<2x144x256xf32> to vector<1x144x256xf32>
    %135 = vector.shape_cast %134 : vector<1x144x256xf32> to vector<144x256xf32>
    %cst_31 = arith.constant dense<0.000000e+00> : vector<16x256xf32>
    %136 = tpu.matmul %133, %135, %cst_31 {dimension_numbers = #tpu.dot_dimension_numbers<[1], [0], [0], [1], [0, 0, 1, 1], [], []>} : vector<16x144xf32>, vector<144x256xf32>, vector<16x256xf32> -> vector<16x256xf32>
    %137 = vector.extract_strided_slice %132 {offsets = [1, 0, 0], sizes = [1, 144, 256], strides = [1, 1, 1]} : vector<2x144x256xf32> to vector<1x144x256xf32>
    %138 = vector.shape_cast %137 : vector<1x144x256xf32> to vector<144x256xf32>
    %cst_32 = arith.constant dense<0.000000e+00> : vector<16x256xf32>
    %139 = tpu.matmul %133, %138, %cst_32 {dimension_numbers = #tpu.dot_dimension_numbers<[1], [0], [0], [1], [0, 0, 1, 1], [], []>} : vector<16x144xf32>, vector<144x256xf32>, vector<16x256xf32> -> vector<16x256xf32>
    %140 = vector.shape_cast %136 : vector<16x256xf32> to vector<1x16x256xf32>
    %141 = vector.shape_cast %139 : vector<16x256xf32> to vector<1x16x256xf32>
    %142 = tpu.concatenate %140, %141 in 0 : vector<1x16x256xf32>, vector<1x16x256xf32> -> vector<2x16x256xf32>
    %cst_33 = arith.constant dense<0.000000e+00> : vector<2x16xf32>
    %143 = vector.multi_reduction <add>, %142, %cst_33 [2] : vector<2x16x256xf32> to vector<2x16xf32>
    %144 = vector.shape_cast %143 : vector<2x16xf32> to vector<2x16x1xf32>
    %cst_34 = arith.constant dense<0.000000e+00> : vector<16x1xf32>
    %145 = vector.multi_reduction <add>, %144, %cst_34 [0] : vector<2x16x1xf32> to vector<16x1xf32>
    %146 = vector.shape_cast %145 : vector<16x1xf32> to vector<1x16x1xf32>
    %147 = arith.mulf %142, %142 : vector<2x16x256xf32>
    %cst_35 = arith.constant dense<0.000000e+00> : vector<2x16xf32>
    %148 = vector.multi_reduction <add>, %147, %cst_35 [2] : vector<2x16x256xf32> to vector<2x16xf32>
    %149 = vector.shape_cast %148 : vector<2x16xf32> to vector<2x16x1xf32>
    %cst_36 = arith.constant dense<0.000000e+00> : vector<16x1xf32>
    %150 = vector.multi_reduction <add>, %149, %cst_36 [0] : vector<2x16x1xf32> to vector<16x1xf32>
    %151 = vector.shape_cast %150 : vector<16x1xf32> to vector<1x16x1xf32>
    %cst_37 = arith.constant 0.001953125 : f32
    %152 = vector.broadcast %cst_37 : f32 to vector<1x16x1xf32>
    %153 = arith.mulf %146, %152 : vector<1x16x1xf32>
    %cst_38 = arith.constant 0.001953125 : f32
    %154 = vector.broadcast %cst_38 : f32 to vector<1x16x1xf32>
    %155 = arith.mulf %151, %154 : vector<1x16x1xf32>
    %156 = arith.mulf %153, %153 : vector<1x16x1xf32>
    %157 = arith.subf %155, %156 : vector<1x16x1xf32>
    %c0_39 = arith.constant 0 : index
    %c0_40 = arith.constant 0 : index
    %158 = vector.load %arg6[%c0_39, %c0_40] : memref<16x1xf32, #tpu.memory_space<vmem>>, vector<16x1xf32>
    %159 = vector.shape_cast %158 : vector<16x1xf32> to vector<1x16x1xf32>
    %cst_41 = arith.constant 9.99999974E-6 : f32
    %160 = vector.broadcast %cst_41 : f32 to vector<1x16x1xf32>
    %161 = arith.addf %157, %160 : vector<1x16x1xf32>
    %162 = math.rsqrt %161 : vector<1x16x1xf32>
    %163 = arith.mulf %159, %162 : vector<1x16x1xf32>
    %c0_42 = arith.constant 0 : index
    %c0_43 = arith.constant 0 : index
    %164 = vector.load %arg7[%c0_42, %c0_43] : memref<16x1xf32, #tpu.memory_space<vmem>>, vector<16x1xf32>
    %165 = vector.shape_cast %164 : vector<16x1xf32> to vector<1x16x1xf32>
    %166 = arith.mulf %153, %163 : vector<1x16x1xf32>
    %167 = arith.subf %165, %166 : vector<1x16x1xf32>
    %168 = vector.broadcast %163 : vector<1x16x1xf32> to vector<2x16x256xf32>
    %169 = arith.mulf %142, %168 : vector<2x16x256xf32>
    %170 = vector.broadcast %167 : vector<1x16x1xf32> to vector<2x16x256xf32>
    %171 = arith.addf %169, %170 : vector<2x16x256xf32>
    %172 = arith.addf %171, %0 : vector<2x16x256xf32>
    %cst_44 = arith.constant 0.000000e+00 : f32
    %173 = vector.broadcast %cst_44 : f32 to vector<2x16x256xf32>
    %174 = arith.maximumf %172, %173 : vector<2x16x256xf32>
    %c0_45 = arith.constant 0 : index
    %c0_46 = arith.constant 0 : index
    %c0_47 = arith.constant 0 : index
    %175 = vector.load %arg8[%c0_45, %c0_46, %c0_47] : memref<2x16x256xf32, #tpu.memory_space<vmem>>, vector<2x16x256xf32>
    tpu.vector_store %arg8[%c0_45, %c0_46, %c0_47], %174 {strides = array<i32>} : memref<2x16x256xf32, #tpu.memory_space<vmem>>, vector<2x16x256xf32>,
    return
  }
}

</mosaic_0001>

<bundles_post_ra>
// kernel: residual_block.1
= control target key start
LH: loop header
LB: loop body
LE: loop exit
PB: predicated region body
PF: predicated region fallthrough
CT: control target
= control target key end

     0   :  { %s1415_s9 = smov 17   ;;  %s1416_s22 = smov 16   ;;  %v62_v8 = vlaneseq  ;;  %vm423_vm0 = vcmask 130048   ;;  %s2524_s0 = inlined_call_operand.vmem [shape: f32[2,16,256], index: 0, kind: input, shape index: {}]   ;;  %s2525_s2 = inlined_call_operand.vmem [shape: f32[16,144], index: 2, kind: input, shape index: {}]   ;;  %s2526_s1 = inlined_call_operand.vmem [shape: f32[9,1,1,256], index: 1, kind: input, shape index: {}]   ;;  %s2527_s3 = inlined_call_operand.vmem [shape: f32[16,1], index: 3, kind: input, shape index: {}]   ;;  %s2528_s4 = inlined_call_operand.vmem [shape: f32[16,1], index: 4, kind: input, shape index: {}]   ;;  %s2529_s5 = inlined_call_operand.vmem [shape: f32[16,144], index: 5, kind: input, shape index: {}]   ;;  %s2530_s6 = inlined_call_operand.vmem [shape: f32[16,1], index: 6, kind: input, shape index: {}]   ;;  %s2531_s7 = inlined_call_operand.vmem [shape: f32[16,1], index: 7, kind: input, shape index: {}]   ;;  %s2532_s8 = inlined_call_operand.vmem [shape: f32[2,16,256], index: 8, kind: output, shape index: {}]  }
   0x1   :  { %v1472_v0 = vld [vmem:[%s2524_s0 + $0x20] sm:$0xff]  ;;  %v1486_v2 = vld [vmem:[%s2524_s0 + $0x30] sm:$0xff]  ;;  %v1500_v4 = vld [vmem:[%s2524_s0 + $0x18] sm:$0xff]  ;;  %s1417_s23 = smov 15   ;;  %s1418_s24 = smov 1  }
   0x2   :  { %v1477_v1 = vld [vmem:[%s2524_s0] sm:$0xff]  ;;  %50 = vrot.lane.b32.xlu1 %v1472_v0, %s1415_s9  ;;  %v1491_v3 = vld [vmem:[%s2524_s0 + $0x10] sm:$0xff]  ;;  %v1505_v5 = vld [vmem:[%s2524_s0 + $0x8] sm:$0xff]  ;;  %s1419_s25 = smov 127   ;;  %s1420_s26 = smov 113   ;;  %v75_v9 = vshrl.u32 %v62_v8, 7 }
   0x3   :  { %46 = vrot.lane.b32.xlu0 %v1477_v1, %s1415_s9  ;;  %v1514_v6 = vld [vmem:[%s2524_s0 + $0x38] sm:$0xff]  ;;  %v1519_v7 = vld [vmem:[%s2524_s0 + $0x28] sm:$0xff]  ;;  %s1421_s27 = smov 112   ;;  %s1422_s28 = smov 111   ;;  %v1634_v13 = vand.u32 127, %v62_v8 }
   0x4   :  { %v420_v12 = vld [vmem:[%s2525_s2 + $0x8] sm:$0xff]  ;;  %v1636_v14 = vsub.s32 1, %v75_v9  ;;  %v1638_v15 = vsub.s32 0, %v75_v9  ;;  %v37_v16 = vld [vmem:[%s2526_s1] sm:$0x3] }
   0x5   :  { %1236 = vmatprep.mubr.msk.f32.mxu0 %vm423_vm0, %v420_v12  ;;  %1238 = vmatprep.mubr.msk.f32.mxu1 %vm423_vm0, %v420_v12  ;;  %vm64_vm1 = vcmp.lt.s32.totalorder %v1634_v13, 17  ;;  %v38_v47 = vld [vmem:[%s2526_s1 + $0x2] sm:$0x3]  ;;  %vm108_vm2 = vcmp.lt.s32.totalorder %v1634_v13, 16  ;;  %vm152_vm3 = vcmp.lt.s32.totalorder %v1634_v13, 15  ;;  %vm196_vm4 = vcmp.lt.s32.totalorder %v1634_v13, 1 }
   0x6   :  { %52 = vrot.lane.b32.xlu1 %v1486_v2, %s1415_s9  ;;  %v1649_v19 = vrot.slane %v37_v16, %v1636_v14  ;;  %v1652_v20 = vrot.slane %v37_v16, %v1638_v15  ;;  %v1687_v50 = vrot.slane %v38_v47, %v1638_v15  ;;  %v1690_v51 = vrot.slane %v38_v47, %v1636_v14 }
   0x7   :  { %48 = vrot.lane.b32.xlu0 %v1491_v3, %s1415_s9  ;;  %vm259_vm5 = vcmp.lt.s32.totalorder %v1634_v13, 127  ;;  %vm303_vm6 = vcmp.lt.s32.totalorder %v1634_v13, 113  ;;  %vm347_vm7 = vcmp.lt.s32.totalorder %v1634_v13, 112  ;;  %vm391_vm8 = vcmp.lt.s32.totalorder %v1634_v13, 111  ;;  %v953_v13 = vld [vmem:[%s2529_s5 + $0x18] sm:$0xff] }
   0xa   :  { %56 = vrot.lane.b32.xlu1 %v1500_v4, %s1415_s9 }
   0xb   :  { %54 = vrot.lane.b32.xlu0 %v1505_v5, %s1415_s9 }
   0xe   :  { %60 = vrot.lane.b32.xlu1 %v1514_v6, %s1415_s9 }
   0xf   :  { %58 = vrot.lane.b32.xlu0 %v1519_v7, %s1415_s9 }
  0x12   :  { %94 = vrot.lane.b32.xlu1 %v1491_v3, %s1416_s22 }
  0x13   :  { %92 = vrot.lane.b32.xlu0 %v1477_v1, %s1416_s22 }
  0x16   :  { %98 = vrot.lane.b32.xlu1 %v1486_v2, %s1416_s22 }
  0x17   :  { %96 = vrot.lane.b32.xlu0 %v1472_v0, %s1416_s22 }
  0x1a   :  { %102 = vrot.lane.b32.xlu1 %v1500_v4, %s1416_s22 }
  0x1b   :  { %100 = vrot.lane.b32.xlu0 %v1505_v5, %s1416_s22 }
  0x1e   :  { %106 = vrot.lane.b32.xlu1 %v1514_v6, %s1416_s22 }
  0x1f   :  { %104 = vrot.lane.b32.xlu0 %v1519_v7, %s1416_s22 }
  0x22   :  { %138 = vrot.lane.b32.xlu1 %v1491_v3, %s1417_s23 }
  0x23   :  { %136 = vrot.lane.b32.xlu0 %v1477_v1, %s1417_s23 }
  0x26   :  { %142 = vrot.lane.b32.xlu1 %v1486_v2, %s1417_s23 }
  0x27   :  { %140 = vrot.lane.b32.xlu0 %v1472_v0, %s1417_s23 }
  0x2a   :  { %146 = vrot.lane.b32.xlu1 %v1500_v4, %s1417_s23 }
  0x2b   :  { %144 = vrot.lane.b32.xlu0 %v1505_v5, %s1417_s23 }
  0x2e   :  { %150 = vrot.lane.b32.xlu1 %v1514_v6, %s1417_s23 }
  0x2f   :  { %148 = vrot.lane.b32.xlu0 %v1519_v7, %s1417_s23 }
  0x32   :  { %182 = vrot.lane.b32.xlu1 %v1491_v3, %s1418_s24 }
  0x33   :  { %180 = vrot.lane.b32.xlu0 %v1477_v1, %s1418_s24 }
  0x36   :  { %186 = vrot.lane.b32.xlu1 %v1486_v2, %s1418_s24 }
  0x37   :  { %184 = vrot.lane.b32.xlu0 %v1472_v0, %s1418_s24 }
  0x3a   :  { %190 = vrot.lane.b32.xlu1 %v1500_v4, %s1418_s24 }
  0x3b   :  { %188 = vrot.lane.b32.xlu0 %v1505_v5, %s1418_s24 }
  0x3e   :  { %194 = vrot.lane.b32.xlu1 %v1514_v6, %s1418_s24 }
  0x3f   :  { %192 = vrot.lane.b32.xlu0 %v1519_v7, %s1418_s24 }
  0x42   :  { %245 = vrot.lane.b32.xlu1 %v1491_v3, %s1419_s25 }
  0x43   :  { %243 = vrot.lane.b32.xlu0 %v1477_v1, %s1419_s25 }
  0x46   :  { %249 = vrot.lane.b32.xlu1 %v1486_v2, %s1419_s25 }
  0x47   :  { %247 = vrot.lane.b32.xlu0 %v1472_v0, %s1419_s25 }
  0x4a   :  { %253 = vrot.lane.b32.xlu1 %v1500_v4, %s1419_s25 }
  0x4b   :  { %251 = vrot.lane.b32.xlu0 %v1505_v5, %s1419_s25 }
  0x4e   :  { %257 = vrot.lane.b32.xlu1 %v1514_v6, %s1419_s25 }
  0x4f   :  { %255 = vrot.lane.b32.xlu0 %v1519_v7, %s1419_s25 }
  0x52   :  { %289 = vrot.lane.b32.xlu1 %v1491_v3, %s1420_s26 }
  0x53   :  { %287 = vrot.lane.b32.xlu0 %v1477_v1, %s1420_s26 }
  0x56   :  { %293 = vrot.lane.b32.xlu1 %v1486_v2, %s1420_s26 }
  0x57   :  { %291 = vrot.lane.b32.xlu0 %v1472_v0, %s1420_s26 }
  0x5a   :  { %297 = vrot.lane.b32.xlu1 %v1500_v4, %s1420_s26 }
  0x5b   :  { %295 = vrot.lane.b32.xlu0 %v1505_v5, %s1420_s26 }
  0x5e   :  { %301 = vrot.lane.b32.xlu1 %v1514_v6, %s1420_s26 }
  0x5f   :  { %299 = vrot.lane.b32.xlu0 %v1519_v7, %s1420_s26 }
  0x62   :  { %333 = vrot.lane.b32.xlu1 %v1491_v3, %s1421_s27 }
  0x63   :  { %331 = vrot.lane.b32.xlu0 %v1477_v1, %s1421_s27 }
  0x66   :  { %337 = vrot.lane.b32.xlu1 %v1486_v2, %s1421_s27 }
  0x67   :  { %335 = vrot.lane.b32.xlu0 %v1472_v0, %s1421_s27 }
  0x6a   :  { %341 = vrot.lane.b32.xlu1 %v1500_v4, %s1421_s27 }
  0x6b   :  { %339 = vrot.lane.b32.xlu0 %v1505_v5, %s1421_s27 }
  0x6e   :  { %345 = vrot.lane.b32.xlu1 %v1514_v6, %s1421_s27 }
  0x6f   :  { %343 = vrot.lane.b32.xlu0 %v1519_v7, %s1421_s27 }
  0x72   :  { %377 = vrot.lane.b32.xlu1 %v1491_v3, %s1422_s28 }
  0x73   :  { %375 = vrot.lane.b32.xlu0 %v1477_v1, %s1422_s28 }
  0x74   :  { %v51_v10 = vpop.permute.xlu1 %50 }
  0x75   :  { %v47_v11 = vpop.permute.xlu0 %46 }
  0x76   :  { %381 = vrot.lane.b32.xlu1 %v1486_v2, %s1422_s28 }
  0x77   :  { %379 = vrot.lane.b32.xlu0 %v1472_v0, %s1422_s28 }
  0x78   :  { %v53_v17 = vpop.permute.xlu1 %52 }
  0x79   :  { %v49_v18 = vpop.permute.xlu0 %48 }
  0x7a   :  { %385 = vrot.lane.b32.xlu1 %v1500_v4, %s1422_s28 }
  0x7b   :  { %383 = vrot.lane.b32.xlu0 %v1505_v5, %s1422_s28 }
  0x7c   :  { %v57_v21 = vpop.permute.xlu1 %56 }
  0x7d   :  { %v55_v22 = vpop.permute.xlu0 %54  ;;  %v70_v23 = vsel %vm64_vm1, %v57_v21, %v49_v18  ;;  %v66_v26 = vsel %vm64_vm1, %v49_v18, %v57_v21 }
  0x7e   :  { %v69_v24 = vsel %vm64_vm1, %v55_v22, %v47_v11  ;;  %v65_v25 = vsel %vm64_vm1, %v47_v11, %v55_v22  ;;  %389 = vrot.lane.b32.xlu1 %v1514_v6, %s1422_s28  ;;  %v87_v28 = vmul.f32 %v1649_v19, %v66_v26  ;;  %v86_v30 = vmul.f32 %v1652_v20, %v70_v23 }
  0x7f   :  { %387 = vrot.lane.b32.xlu0 %v1519_v7, %s1422_s28  ;;  %v85_v27 = vmul.f32 %v1649_v19, %v65_v25  ;;  %v84_v29 = vmul.f32 %v1652_v20, %v69_v24 }
  0x80   :  { %v61_v31 = vpop.permute.xlu1 %60 }
  0x81   :  { %v59_v32 = vpop.permute.xlu0 %58  ;;  %v1244_v33 = vpack.c.bf16 %v87_v28, %v85_v27  ;;  %v72_v34 = vsel %vm64_vm1, %v61_v31, %v53_v17  ;;  %v1246_v36 = vpack.c.bf16 %v86_v30, %v84_v29  ;;  %v68_v38 = vsel %vm64_vm1, %v53_v17, %v61_v31  ;;  %v39_v27 = vld [vmem:[%s2526_s1 + $0x4] sm:$0x3] }
  0x82   :  { %v71_v35 = vsel %vm64_vm1, %v59_v32, %v51_v10  ;;  %v67_v37 = vsel %vm64_vm1, %v51_v10, %v59_v32  ;;  %v90_v41 = vmul.f32 %v1652_v20, %v72_v34  ;;  %v91_v42 = vmul.f32 %v1649_v19, %v68_v38 }
  0x83   :  { %1245 = vmatprep.subr.bf16.mxu0 %v1244_v33  ;;  %v89_v39 = vmul.f32 %v1649_v19, %v67_v37  ;;  %v88_v40 = vmul.f32 %v1652_v20, %v71_v35  ;;  %v1721_v30 = vrot.slane %v39_v27, %v1638_v15  ;;  %v1724_v31 = vrot.slane %v39_v27, %v1636_v14 }
  0x84   :  { %1247 = vmatpush1.bf16.msra.mxu0 %v1246_v36  ;;  %v95_v43 = vpop.permute.xlu1 %94 }
  0x85   :  { %v93_v44 = vpop.permute.xlu0 %92  ;;  %v1282_v45 = vpack.c.bf16 %v90_v41, %v88_v40  ;;  %v1280_v46 = vpack.c.bf16 %v91_v42, %v89_v39 }
  0x87   :  { %1281 = vmatprep.subr.bf16.mxu1 %v1280_v46 }
  0x88   :  { %1283 = vmatpush1.bf16.msra.mxu1 %v1282_v45  ;;  %v99_v48 = vpop.permute.xlu1 %98 }
  0x89   :  { %v97_v49 = vpop.permute.xlu0 %96 }
  0x8c   :  { %v103_v52 = vpop.permute.xlu1 %102 }
  0x8d   :  { %v101_v53 = vpop.permute.xlu0 %100  ;;  %v110_v54 = vsel %vm108_vm2, %v95_v43, %v103_v52  ;;  %v114_v55 = vsel %vm108_vm2, %v103_v52, %v95_v43 }
  0x8e   :  { %v109_v56 = vsel %vm108_vm2, %v93_v44, %v101_v53  ;;  %v113_v57 = vsel %vm108_vm2, %v101_v53, %v93_v44  ;;  %v130_v58 = vmul.f32 %v1687_v50, %v114_v55  ;;  %v131_v59 = vmul.f32 %v1690_v51, %v110_v54 }
  0x8f   :  { %v128_v60 = vmul.f32 %v1687_v50, %v113_v57  ;;  %v129_v61 = vmul.f32 %v1690_v51, %v109_v56 }
  0x90   :  { %v107_v62 = vpop.permute.xlu1 %106 }
  0x91   :  { %v105_v63 = vpop.permute.xlu0 %104  ;;  %v1248_v8 = vpack.c.bf16 %v131_v59, %v129_v61  ;;  %v1250_v9 = vpack.c.bf16 %v130_v58, %v128_v60  ;;  %v112_v10 = vsel %vm108_vm2, %v99_v48, %v107_v62  ;;  %v116_v11 = vsel %vm108_vm2, %v107_v62, %v99_v48  ;;  %v41_v60 = vld [vmem:[%s2526_s1 + $0x8] sm:$0x3]  ;;  %v40_v61 = vld [vmem:[%s2526_s1 + $0x6] sm:$0x3] }
  0x92   :  { %v111_v12 = vsel %vm108_vm2, %v97_v49, %v105_v63  ;;  %v115_v16 = vsel %vm108_vm2, %v105_v63, %v97_v49  ;;  %v134_v17 = vmul.f32 %v1687_v50, %v116_v11  ;;  %v135_v18 = vmul.f32 %v1690_v51, %v112_v10 }
  0x93   :  { %v132_v21 = vmul.f32 %v1687_v50, %v115_v16  ;;  %v133_v22 = vmul.f32 %v1690_v51, %v111_v12  ;;  %1249 = vmatprep.subr.bf16.mxu0 %v1248_v8  ;;  %v1757_v62 = vrot.slane %v41_v60, %v1636_v14  ;;  %v1764_v10 = vrot.slane %v40_v61, %v1636_v14 }
  0x94   :  { %1251 = vmatpush1.bf16.msra.mxu0 %v1250_v9  ;;  %v139_v23 = vpop.permute.xlu1 %138  ;;  %v1761_v9 = vrot.slane %v40_v61, %v1638_v15  ;;  %v1771_v16 = vrot.slane %v41_v60, %v1638_v15 }
  0x95   :  { %v137_v24 = vpop.permute.xlu0 %136  ;;  %v1284_v25 = vpack.c.bf16 %v135_v18, %v133_v22  ;;  %v1286_v26 = vpack.c.bf16 %v134_v17, %v132_v21  ;;  %v236_v11 = vmul.f32 %v1757_v62, %v1505_v5  ;;  %v238_v12 = vmul.f32 %v1757_v62, %v1500_v4 }
  0x97   :  { %1285 = vmatprep.subr.bf16.mxu1 %v1284_v25  ;;  %v1260_v27 = vpack.c.bf16 %v238_v12, %v236_v11 }
  0x98   :  { %1287 = vmatpush1.bf16.msra.mxu1 %v1286_v26  ;;  %v143_v28 = vpop.permute.xlu1 %142 }
  0x99   :  { %v141_v29 = vpop.permute.xlu0 %140 }
  0x9c   :  { %v147_v32 = vpop.permute.xlu1 %146 }
  0x9d   :  { %v145_v33 = vpop.permute.xlu0 %144  ;;  %v154_v34 = vsel %vm152_vm3, %v139_v23, %v147_v32  ;;  %v158_v35 = vsel %vm152_vm3, %v147_v32, %v139_v23 }
  0x9e   :  { %v153_v36 = vsel %vm152_vm3, %v137_v24, %v145_v33  ;;  %v157_v37 = vsel %vm152_vm3, %v145_v33, %v137_v24  ;;  %v174_v38 = vmul.f32 %v1721_v30, %v158_v35  ;;  %v175_v39 = vmul.f32 %v1724_v31, %v154_v34 }
  0x9f   :  { %v172_v40 = vmul.f32 %v1721_v30, %v157_v37  ;;  %v173_v41 = vmul.f32 %v1724_v31, %v153_v36  ;;  %v240_v36 = vmul.f32 %v1757_v62, %v1519_v7  ;;  %v242_v37 = vmul.f32 %v1757_v62, %v1514_v6 }
  0xa0   :  { %v151_v42 = vpop.permute.xlu1 %150 }
  0xa1   :  { %v149_v43 = vpop.permute.xlu0 %148  ;;  %v1252_v44 = vpack.c.bf16 %v175_v39, %v173_v41  ;;  %v1254_v45 = vpack.c.bf16 %v174_v38, %v172_v40  ;;  %v156_v46 = vsel %vm152_vm3, %v143_v28, %v151_v42  ;;  %v160_v47 = vsel %vm152_vm3, %v151_v42, %v143_v28 }
  0xa2   :  { %v155_v48 = vsel %vm152_vm3, %v141_v29, %v149_v43  ;;  %v159_v49 = vsel %vm152_vm3, %v149_v43, %v141_v29  ;;  %v178_v52 = vmul.f32 %v1721_v30, %v160_v47  ;;  %v179_v53 = vmul.f32 %v1724_v31, %v156_v46 }
  0xa3   :  { %v176_v54 = vmul.f32 %v1721_v30, %v159_v49  ;;  %v177_v55 = vmul.f32 %v1724_v31, %v155_v48  ;;  %1253 = vmatprep.subr.bf16.mxu0 %v1252_v44  ;;  %v235_v28 = vmul.f32 %v1771_v16, %v1477_v1  ;;  %v237_v29 = vmul.f32 %v1771_v16, %v1491_v3 }
  0xa4   :  { %1255 = vmatpush1.bf16.msra.mxu0 %v1254_v45  ;;  %v183_v56 = vpop.permute.xlu1 %182  ;;  %v239_v43 = vmul.f32 %v1771_v16, %v1472_v0  ;;  %v241_v44 = vmul.f32 %v1771_v16, %v1486_v2  ;;  %v1296_v49 = vpack.c.bf16 %v242_v37, %v240_v36 }
  0xa5   :  { %v181_v57 = vpop.permute.xlu0 %180  ;;  %v1288_v58 = vpack.c.bf16 %v179_v53, %v177_v55  ;;  %v1290_v59 = vpack.c.bf16 %v178_v52, %v176_v54  ;;  %v1262_v42 = vpack.c.bf16 %v237_v29, %v235_v28  ;;  %v42_v52 = vld [vmem:[%s2526_s1 + $0xa] sm:$0x3] }
  0xa6   :  { %v1298_v53 = vpack.c.bf16 %v241_v44, %v239_v43  ;;  %v1814_v0 = vrot.slane %v42_v52, %v1638_v15  ;;  %v1817_v2 = vrot.slane %v42_v52, %v1636_v14 }
  0xa7   :  { %1289 = vmatprep.subr.bf16.mxu1 %v1288_v58 }
  0xa8   :  { %1291 = vmatpush1.bf16.msra.mxu1 %v1290_v59  ;;  %v187_v63 = vpop.permute.xlu1 %186 }
  0xa9   :  { %v185_v8 = vpop.permute.xlu0 %184 }
  0xac   :  { %v191_v17 = vpop.permute.xlu1 %190 }
  0xad   :  { %v189_v18 = vpop.permute.xlu0 %188  ;;  %v198_v21 = vsel %vm196_vm4, %v183_v56, %v191_v17  ;;  %v202_v22 = vsel %vm196_vm4, %v191_v17, %v183_v56 }
  0xae   :  { %v197_v23 = vsel %vm196_vm4, %v181_v57, %v189_v18  ;;  %v201_v5 = vsel %vm196_vm4, %v189_v18, %v181_v57  ;;  %v218_v24 = vmul.f32 %v1761_v9, %v202_v22  ;;  %v219_v4 = vmul.f32 %v1764_v10, %v198_v21 }
  0xaf   :  { %v216_v25 = vmul.f32 %v1761_v9, %v201_v5  ;;  %v217_v26 = vmul.f32 %v1764_v10, %v197_v23 }
  0xb0   :  { %v195_v32 = vpop.permute.xlu1 %194 }
  0xb1   :  { %v193_v33 = vpop.permute.xlu0 %192  ;;  %v1256_v34 = vpack.c.bf16 %v219_v4, %v217_v26  ;;  %v1258_v35 = vpack.c.bf16 %v218_v24, %v216_v25  ;;  %v200_v38 = vsel %vm196_vm4, %v187_v63, %v195_v32  ;;  %v204_v39 = vsel %vm196_vm4, %v195_v32, %v187_v63 }
  0xb2   :  { %v199_v1 = vsel %vm196_vm4, %v185_v8, %v193_v33  ;;  %v203_v3 = vsel %vm196_vm4, %v193_v33, %v185_v8  ;;  %v222_v40 = vmul.f32 %v1761_v9, %v204_v39  ;;  %v223_v41 = vmul.f32 %v1764_v10, %v200_v38 }
  0xb3   :  { %v220_v7 = vmul.f32 %v1761_v9, %v203_v3  ;;  %v221_v6 = vmul.f32 %v1764_v10, %v199_v1  ;;  %1257 = vmatprep.subr.bf16.mxu0 %v1256_v34 }
  0xb4   :  { %1259 = vmatpush1.bf16.msra.mxu0 %v1258_v35  ;;  %v246_v45 = vpop.permute.xlu1 %245  ;;  %v43_v35 = vld [vmem:[%s2526_s1 + $0xc] sm:$0x3] }
  0xb5   :  { %v244_v46 = vpop.permute.xlu0 %243  ;;  %v1292_v47 = vpack.c.bf16 %v223_v41, %v221_v6  ;;  %v1294_v48 = vpack.c.bf16 %v222_v40, %v220_v7  ;;  %1261 = vmatprep.subr.bf16.mxu0 %v1260_v27  ;;  %v1848_v38 = vrot.slane %v43_v35, %v1638_v15  ;;  %v1851_v39 = vrot.slane %v43_v35, %v1636_v14 }
  0xb7   :  { %1293 = vmatprep.subr.bf16.mxu1 %v1292_v47 }
  0xb8   :  { %1295 = vmatpush1.bf16.msra.mxu1 %v1294_v48  ;;  %1263 = vmatpush1.bf16.msra.mxu0 %v1262_v42  ;;  %v250_v54 = vpop.permute.xlu1 %249 }
  0xb9   :  { %v248_v55 = vpop.permute.xlu0 %247  ;;  %1297 = vmatprep.subr.bf16.mxu1 %v1296_v49 }
  0xbc   :  { %1299 = vmatpush1.bf16.msra.mxu1 %v1298_v53  ;;  %v254_v56 = vpop.permute.xlu1 %253 }
  0xbd   :  { %v252_v57 = vpop.permute.xlu0 %251  ;;  %v261_v58 = vsel %vm259_vm5, %v246_v45, %v254_v56  ;;  %v265_v59 = vsel %vm259_vm5, %v254_v56, %v246_v45 }
  0xbe   :  { %v260_v60 = vsel %vm259_vm5, %v244_v46, %v252_v57  ;;  %v264_v61 = vsel %vm259_vm5, %v252_v57, %v244_v46  ;;  %v281_v63 = vmul.f32 %v1814_v0, %v261_v58  ;;  %v282_v8 = vmul.f32 %v1817_v2, %v265_v59 }
  0xbf   :  { %v279_v11 = vmul.f32 %v1814_v0, %v260_v60  ;;  %v280_v12 = vmul.f32 %v1817_v2, %v264_v61 }
  0xc0   :  { %v258_v17 = vpop.permute.xlu1 %257 }
  0xc1   :  { %v256_v18 = vpop.permute.xlu0 %255  ;;  %v1264_v21 = vpack.c.bf16 %v282_v8, %v280_v12  ;;  %v1266_v22 = vpack.c.bf16 %v281_v63, %v279_v11  ;;  %v263_v23 = vsel %vm259_vm5, %v250_v54, %v258_v17  ;;  %v267_v5 = vsel %vm259_vm5, %v258_v17, %v250_v54  ;;  %v44_v11 = vld [vmem:[%s2526_s1 + $0xe] sm:$0x3] }
  0xc2   :  { %v262_v24 = vsel %vm259_vm5, %v248_v55, %v256_v18  ;;  %v266_v4 = vsel %vm259_vm5, %v256_v18, %v248_v55  ;;  %v285_v25 = vmul.f32 %v1814_v0, %v263_v23  ;;  %v286_v26 = vmul.f32 %v1817_v2, %v267_v5 }
  0xc3   :  { %v283_v27 = vmul.f32 %v1814_v0, %v262_v24  ;;  %v284_v28 = vmul.f32 %v1817_v2, %v266_v4  ;;  %1265 = vmatprep.subr.bf16.mxu0 %v1264_v21  ;;  %v1882_v18 = vrot.slane %v44_v11, %v1638_v15  ;;  %v1885_v21 = vrot.slane %v44_v11, %v1636_v14 }
  0xc4   :  { %1267 = vmatpush1.bf16.msra.mxu0 %v1266_v22  ;;  %v290_v29 = vpop.permute.xlu1 %289 }
  0xc5   :  { %v288_v32 = vpop.permute.xlu0 %287  ;;  %v1300_v33 = vpack.c.bf16 %v286_v26, %v284_v28  ;;  %v1302_v34 = vpack.c.bf16 %v285_v25, %v283_v27 }
  0xc7   :  { %1301 = vmatprep.subr.bf16.mxu1 %v1300_v33 }
  0xc8   :  { %1303 = vmatpush1.bf16.msra.mxu1 %v1302_v34  ;;  %v294_v36 = vpop.permute.xlu1 %293 }
  0xc9   :  { %v292_v37 = vpop.permute.xlu0 %291 }
  0xcc   :  { %v298_v1 = vpop.permute.xlu1 %297 }
  0xcd   :  { %v296_v3 = vpop.permute.xlu0 %295  ;;  %v305_v40 = vsel %vm303_vm6, %v290_v29, %v298_v1  ;;  %v309_v41 = vsel %vm303_vm6, %v298_v1, %v290_v29 }
  0xce   :  { %v304_v7 = vsel %vm303_vm6, %v288_v32, %v296_v3  ;;  %v308_v6 = vsel %vm303_vm6, %v296_v3, %v288_v32  ;;  %v325_v42 = vmul.f32 %v1848_v38, %v305_v40  ;;  %v326_v43 = vmul.f32 %v1851_v39, %v309_v41 }
  0xcf   :  { %v323_v44 = vmul.f32 %v1848_v38, %v304_v7  ;;  %v324_v45 = vmul.f32 %v1851_v39, %v308_v6 }
  0xd0   :  { %v302_v46 = vpop.permute.xlu1 %301 }
  0xd1   :  { %v300_v47 = vpop.permute.xlu0 %299  ;;  %v1268_v48 = vpack.c.bf16 %v326_v43, %v324_v45  ;;  %v1270_v49 = vpack.c.bf16 %v325_v42, %v323_v44  ;;  %v307_v52 = vsel %vm303_vm6, %v294_v36, %v302_v46  ;;  %v311_v53 = vsel %vm303_vm6, %v302_v46, %v294_v36  ;;  %v45_v46 = vld [vmem:[%s2526_s1 + $0x10] sm:$0x3] }
  0xd2   :  { %v306_v54 = vsel %vm303_vm6, %v292_v37, %v300_v47  ;;  %v310_v55 = vsel %vm303_vm6, %v300_v47, %v292_v37  ;;  %v329_v56 = vmul.f32 %v1848_v38, %v307_v52  ;;  %v330_v57 = vmul.f32 %v1851_v39, %v311_v53 }
  0xd3   :  { %v327_v58 = vmul.f32 %v1848_v38, %v306_v54  ;;  %v328_v59 = vmul.f32 %v1851_v39, %v310_v55  ;;  %1269 = vmatprep.subr.bf16.mxu0 %v1268_v48  ;;  %v1919_v52 = vrot.slane %v45_v46, %v1636_v14 }
  0xd4   :  { %1271 = vmatpush1.bf16.msra.mxu0 %v1270_v49  ;;  %v334_v60 = vpop.permute.xlu1 %333  ;;  %v1916_v49 = vrot.slane %v45_v46, %v1638_v15 }
  0xd5   :  { %v332_v61 = vpop.permute.xlu0 %331  ;;  %v1304_v63 = vpack.c.bf16 %v330_v57, %v328_v59  ;;  %v1306_v8 = vpack.c.bf16 %v329_v56, %v327_v58 }
  0xd7   :  { %1305 = vmatprep.subr.bf16.mxu1 %v1304_v63 }
  0xd8   :  { %1307 = vmatpush1.bf16.msra.mxu1 %v1306_v8  ;;  %v338_v12 = vpop.permute.xlu1 %337 }
  0xd9   :  { %v336_v17 = vpop.permute.xlu0 %335 }
  0xdc   :  { %v342_v22 = vpop.permute.xlu1 %341 }
  0xdd   :  { %v340_v23 = vpop.permute.xlu0 %339  ;;  %v349_v5 = vsel %vm347_vm7, %v334_v60, %v342_v22  ;;  %v353_v24 = vsel %vm347_vm7, %v342_v22, %v334_v60 }
  0xde   :  { %v348_v4 = vsel %vm347_vm7, %v332_v61, %v340_v23  ;;  %v352_v25 = vsel %vm347_vm7, %v340_v23, %v332_v61  ;;  %v369_v26 = vmul.f32 %v1882_v18, %v349_v5  ;;  %v370_v27 = vmul.f32 %v1885_v21, %v353_v24 }
  0xdf   :  { %v367_v28 = vmul.f32 %v1882_v18, %v348_v4  ;;  %v368_v29 = vmul.f32 %v1885_v21, %v352_v25 }
  0xe0   :  { %v346_v32 = vpop.permute.xlu1 %345 }
  0xe1   :  { %v344_v33 = vpop.permute.xlu0 %343  ;;  %v1272_v34 = vpack.c.bf16 %v370_v27, %v368_v29  ;;  %v1274_v35 = vpack.c.bf16 %v369_v26, %v367_v28  ;;  %v351_v36 = vsel %vm347_vm7, %v338_v12, %v346_v32  ;;  %v355_v37 = vsel %vm347_vm7, %v346_v32, %v338_v12  ;;  %v419_v26 = vld [vmem:[%s2525_s2] sm:$0xff]  ;;  %v422_v29 = vld [vmem:[%s2525_s2 + $0x18] sm:$0xff]  ;;  %v421_v32 = vld [vmem:[%s2525_s2 + $0x10] sm:$0xff] }
  0xe2   :  { %v350_v1 = vsel %vm347_vm7, %v336_v17, %v344_v33  ;;  %v354_v3 = vsel %vm347_vm7, %v344_v33, %v336_v17  ;;  %v373_v40 = vmul.f32 %v1882_v18, %v351_v36  ;;  %v374_v41 = vmul.f32 %v1885_v21, %v355_v37 }
  0xe3   :  { %v371_v7 = vmul.f32 %v1882_v18, %v350_v1  ;;  %v372_v6 = vmul.f32 %v1885_v21, %v354_v3  ;;  %1273 = vmatprep.subr.bf16.mxu0 %v1272_v34 }
  0xe4   :  { %1275 = vmatpush1.bf16.msra.mxu0 %v1274_v35  ;;  %v378_v42 = vpop.permute.xlu1 %377 }
  0xe5   :  { %v376_v43 = vpop.permute.xlu0 %375  ;;  %v1308_v44 = vpack.c.bf16 %v374_v41, %v372_v6  ;;  %v1310_v45 = vpack.c.bf16 %v373_v40, %v371_v7 }
  0xe7   :  { %1309 = vmatprep.subr.bf16.mxu1 %v1308_v44 }
  0xe8   :  { %1311 = vmatpush1.bf16.msra.mxu1 %v1310_v45  ;;  %v382_v47 = vpop.permute.xlu1 %381 }
  0xe9   :  { %v380_v48 = vpop.permute.xlu0 %379 }
  0xec   :  { %v386_v53 = vpop.permute.xlu1 %385 }
  0xed   :  { %v384_v54 = vpop.permute.xlu0 %383  ;;  %v393_v55 = vsel %vm391_vm8, %v378_v42, %v386_v53  ;;  %v397_v56 = vsel %vm391_vm8, %v386_v53, %v378_v42 }
  0xee   :  { %v392_v57 = vsel %vm391_vm8, %v376_v43, %v384_v54  ;;  %v396_v58 = vsel %vm391_vm8, %v384_v54, %v376_v43  ;;  %v413_v15 = vmul.f32 %v1916_v49, %v393_v55  ;;  %v414_v59 = vmul.f32 %v1919_v52, %v397_v56 }
  0xef   :  { %v411_v14 = vmul.f32 %v1916_v49, %v392_v57  ;;  %v412_v60 = vmul.f32 %v1919_v52, %v396_v58 }
  0xf0   :  { %v390_v61 = vpop.permute.xlu1 %389 }
  0xf1   :  { %v388_v63 = vpop.permute.xlu0 %387  ;;  %v1276_v8 = vpack.c.bf16 %v414_v59, %v412_v60  ;;  %v1278_v11 = vpack.c.bf16 %v413_v15, %v411_v14  ;;  %v395_v12 = vsel %vm391_vm8, %v382_v47, %v390_v61  ;;  %v399_v17 = vsel %vm391_vm8, %v390_v61, %v382_v47 }
  0xf2   :  { %v394_v22 = vsel %vm391_vm8, %v380_v48, %v388_v63  ;;  %v398_v23 = vsel %vm391_vm8, %v388_v63, %v380_v48  ;;  %v417_v5 = vmul.f32 %v1916_v49, %v395_v12  ;;  %v418_v24 = vmul.f32 %v1919_v52, %v399_v17 }
  0xf3   :  { %v415_v4 = vmul.f32 %v1916_v49, %v394_v22  ;;  %v416_v25 = vmul.f32 %v1919_v52, %v398_v23  ;;  %1277 = vmatprep.subr.bf16.mxu0 %v1276_v8  ;;  %v1423_v15 = vmov 0  }
  0xf4   :  { %1279 = vmatpush1.bf16.msra.mxu0 %v1278_v11  ;;  %1397 = vset.pattern.permute.xlu1 %v1423_v15 }
  0xf5   :  { %v1312_v27 = vpack.c.bf16 %v418_v24, %v416_v25  ;;  %v1314_v28 = vpack.c.bf16 %v417_v5, %v415_v4  ;;  %1398 = vset.pattern.permute.xlu0 %v1423_v15 }
  0xf7   :  { %495 = vmatmul.mubr.f32.vlgmr.msra.gmra.mrb[0].mxu0 %v419_v26  ;;  %1313 = vmatprep.subr.bf16.mxu1 %v1312_v27 }
  0xf8   :  { %1315 = vmatpush1.bf16.msra.mxu1 %v1314_v28  ;;  %1237 = vmatprep.mubr.msk.f32.mxu0 %vm423_vm0, %v422_v29 }
  0xfb   :  { %572 = vmatmul.mubr.f32.vlgmr.msra.gmra.mrb[0].mxu1 %v419_v26  ;;  %501 = vmatmul.mubr.f32.gmra.mrb[2].mxu0 %v421_v32 }
  0xfc   :  { %1239 = vmatprep.mubr.msk.f32.mxu1 %vm423_vm0, %v422_v29 }
  0xff   :  { %578 = vmatmul.mubr.f32.gmra.mrb[2].mxu1 %v421_v32 }
 0x1ca   :  { %v1956_v33 = vpop.f32.mrb[0].mxu0 }
 0x1cb   :  { %v1958_v34 = vpop.f32.mrb[1].mxu0  ;;  %v598_v35 = vmul.f32 %v1956_v33, %v1956_v33 }
 0x1cc   :  { %v584_v36 = vadd.f32 %v1958_v34, %v1956_v33  ;;  %v599_v37 = vmul.f32 %v1958_v34, %v1958_v34 }
 0x1ce   :  { %v1966_v1 = vpop.f32.mrb[0].mxu1  ;;  %585 = vadd.xlane.f32.xlu0 %v584_v36  ;;  %v1968_v3 = vpop.f32.mrb[2].mxu0  ;;  %v606_v40 = vadd.f32 %v599_v37, %v598_v35  ;;  %v628_v37 = vld [vmem:[%s2527_s3] sm:$0xff] }
 0x1cf   :  { %v1970_v41 = vpop.f32.mrb[1].mxu1  ;;  %v1972_v7 = vpop.f32.mrb[3].mxu0  ;;  %v602_v6 = vmul.f32 %v1966_v1, %v1966_v1  ;;  %v600_v42 = vmul.f32 %v1968_v3, %v1968_v3 }
 0x1d0   :  { %607 = vadd.xlane.f32.xlu1 %v606_v40  ;;  %v590_v43 = vadd.f32 %v1970_v41, %v1966_v1  ;;  %v587_v44 = vadd.f32 %v1972_v7, %v1968_v3  ;;  %v603_v45 = vmul.f32 %v1970_v41, %v1970_v41  ;;  %v601_v46 = vmul.f32 %v1972_v7, %v1972_v7 }
 0x1d2   :  { %v1986_v47 = vpop.f32.mrb[2].mxu1  ;;  %591 = vadd.xlane.f32.xlu0 %v590_v43  ;;  %v612_v48 = vadd.f32 %v603_v45, %v602_v6  ;;  %v609_v53 = vadd.f32 %v601_v46, %v600_v42  ;;  %v636_v42 = vld [vmem:[%s2528_s4] sm:$0xff] }
 0x1d3   :  { %v1988_v54 = vpop.f32.mrb[3].mxu1  ;;  %v604_v55 = vmul.f32 %v1986_v47, %v1986_v47 }
 0x1d4   :  { %588 = vadd.xlane.f32.xlu1 %v587_v44  ;;  %v593_v56 = vadd.f32 %v1988_v54, %v1986_v47  ;;  %v605_v57 = vmul.f32 %v1988_v54, %v1988_v54  ;;  %v629_v44 = vld [vmem:[%s2527_s3 + $0x8] sm:$0xff] }
 0x1d6   :  { %594 = vadd.xlane.f32.xlu0 %v593_v56  ;;  %v615_v58 = vadd.f32 %v605_v57, %v604_v55 }
 0x1d8   :  { %613 = vadd.xlane.f32.xlu1 %v612_v48 }
 0x1da   :  { %610 = vadd.xlane.f32.xlu0 %v609_v53  ;;  %v637_v53 = vld [vmem:[%s2528_s4 + $0x8] sm:$0xff] }
 0x1de   :  { %616 = vadd.xlane.f32.xlu0 %v615_v58 }
 0x25b   :  { %v586_v59 = vpop.xlane.xlu0 %585 }
 0x25d   :  { %v608_v14 = vpop.xlane.xlu1 %607 }
 0x25f   :  { %v592_v60 = vpop.xlane.xlu0 %591 }
 0x260   :  { %v596_v61 = vadd.f32 %v592_v60, %v586_v59 }
 0x261   :  { %v589_v63 = vpop.xlane.xlu1 %588 }
 0x262   :  { %v620_v11 = vmul.f32 0.001953125, %v596_v61 }
 0x263   :  { %v595_v8 = vpop.xlane.xlu0 %594 }
 0x264   :  { %v597_v17 = vadd.f32 %v595_v8, %v589_v63  ;;  %v624_v5 = vmul.f32 %v620_v11, %v620_v11 }
 0x265   :  { %v614_v12 = vpop.xlane.xlu1 %613 }
 0x266   :  { %v618_v22 = vadd.f32 %v614_v12, %v608_v14  ;;  %v621_v4 = vmul.f32 0.001953125, %v597_v17 }
 0x267   :  { %v611_v23 = vpop.xlane.xlu0 %610 }
 0x268   :  { %v622_v24 = vmul.f32 0.001953125, %v618_v22  ;;  %v625_v29 = vmul.f32 %v621_v4, %v621_v4 }
 0x26a   :  { %v626_v25 = vsub.f32 %v622_v24, %v624_v5 }
 0x26b   :  { %v617_v26 = vpop.xlane.xlu0 %616 }
 0x26c   :  { %v630_v27 = vadd.f32 1e-05, %v626_v25  ;;  %v619_v28 = vadd.f32 %v617_v26, %v611_v23 }
 0x26e   :  { %1399 = vrsqrt.f32 %v630_v27  ;;  %v623_v32 = vmul.f32 0.001953125, %v619_v28 }
 0x270   :  { %v627_v35 = vsub.f32 %v623_v32, %v625_v29 }
 0x272   :  { %v631_v36 = vadd.f32 1e-05, %v627_v35 }
 0x274   :  { %1401 = vrsqrt.f32 %v631_v36 }
 0x278   :  { %v1400_v40 = vpop.eup %1399 }
 0x279   :  { %v634_v6 = vmul.f32 %v1400_v40, %v628_v37 }
 0x27b   :  { %644 = vperm.xlu1 %1397, %v634_v6   ;;  %v638_v43 = vmul.f32 %v634_v6, %v620_v11 }
 0x27d   :  { %v640_v45 = vsub.f32 %v636_v42, %v638_v43  ;;  %v951_v42 = vld [vmem:[%s2529_s5 + $0x8] sm:$0xff] }
 0x27e   :  { %v1402_v46 = vpop.eup %1401  ;;  %1240 = vmatprep.mubr.msk.f32.mxu0 %vm423_vm0, %v951_v42  ;;  %1242 = vmatprep.mubr.msk.f32.mxu1 %vm423_vm0, %v951_v42 }
 0x27f   :  { %662 = vperm.xlu1 %1397, %v640_v45   ;;  %v635_v48 = vmul.f32 %v1402_v46, %v629_v44 }
 0x281   :  { %649 = vperm.xlu0 %1398, %v635_v48   ;;  %v639_v55 = vmul.f32 %v635_v48, %v621_v4 }
 0x283   :  { %v641_v56 = vsub.f32 %v637_v53, %v639_v55 }
 0x285   :  { %667 = vperm.xlu1 %1397, %v641_v56  }
 0x2fa   :  { %v645_v57 = vpop.permute.xlu1 %644 }
 0x2fb   :  { %v652_v58 = vmul.f32 %v645_v57, %v1956_v33  ;;  %v657_v15 = vmul.f32 %v645_v57, %v1970_v41  ;;  %v656_v14 = vmul.f32 %v645_v57, %v1966_v1  ;;  %v653_v12 = vmul.f32 %v645_v57, %v1958_v34 }
 0x2fe   :  { %v663_v59 = vpop.permute.xlu1 %662 }
 0x2ff   :  { %v670_v60 = vadd.f32 %v663_v59, %v652_v58  ;;  %v675_v61 = vadd.f32 %v663_v59, %v657_v15  ;;  %v674_v63 = vadd.f32 %v663_v59, %v656_v14  ;;  %v671_v41 = vadd.f32 %v663_v59, %v653_v12 }
 0x300   :  { %v650_v33 = vpop.permute.xlu0 %649 }
 0x301   :  { %v2011_v8 = vmax.f32 %v670_v60, 0.0  ;;  %v2013_v11 = vmax.f32 %v675_v61, 0.0  ;;  %v2020_v17 = vmax.f32 %v674_v63, 0.0  ;;  %v654_v22 = vmul.f32 %v650_v33, %v1968_v3 }
 0x302   :  { %v2027_v34 = vmax.f32 %v671_v41, 0.0  ;;  %v658_v5 = vmul.f32 %v650_v33, %v1986_v47  ;;  %v655_v3 = vmul.f32 %v650_v33, %v1972_v7  ;;  %v659_v47 = vmul.f32 %v650_v33, %v1988_v54 }
 0x303   :  { %698 = vrot.lane.b32.xlu0 %v2013_v11, %s1415_s9  ;;  %686 = vrot.lane.b32.xlu1 %v2011_v8, %s1415_s9 }
 0x304   :  { %v668_v1 = vpop.permute.xlu1 %667 }
 0x305   :  { %v672_v23 = vadd.f32 %v668_v1, %v654_v22  ;;  %v676_v24 = vadd.f32 %v668_v1, %v658_v5  ;;  %v673_v25 = vadd.f32 %v668_v1, %v655_v3  ;;  %v677_v27 = vadd.f32 %v668_v1, %v659_v47 }
 0x307   :  { %718 = vrot.lane.b32.xlu0 %v2011_v8, %s1416_s22  ;;  %690 = vrot.lane.b32.xlu1 %v2020_v17, %s1415_s9  ;;  %v2034_v4 = vmax.f32 %v672_v23, 0.0  ;;  %v2041_v26 = vmax.f32 %v676_v24, 0.0  ;;  %v2048_v28 = vmax.f32 %v673_v25, 0.0  ;;  %v2054_v7 = vmax.f32 %v677_v27, 0.0 }
 0x30b   :  { %722 = vrot.lane.b32.xlu0 %v2020_v17, %s1416_s22  ;;  %694 = vrot.lane.b32.xlu1 %v2027_v34, %s1415_s9 }
 0x30f   :  { %726 = vrot.lane.b32.xlu0 %v2027_v34, %s1416_s22  ;;  %688 = vrot.lane.b32.xlu1 %v2034_v4, %s1415_s9 }
 0x313   :  { %730 = vrot.lane.b32.xlu0 %v2013_v11, %s1416_s22  ;;  %692 = vrot.lane.b32.xlu1 %v2041_v26, %s1415_s9 }
 0x317   :  { %750 = vrot.lane.b32.xlu0 %v2011_v8, %s1417_s23  ;;  %696 = vrot.lane.b32.xlu1 %v2048_v28, %s1415_s9 }
 0x31b   :  { %754 = vrot.lane.b32.xlu0 %v2020_v17, %s1417_s23  ;;  %700 = vrot.lane.b32.xlu1 %v2054_v7, %s1415_s9 }
 0x31f   :  { %758 = vrot.lane.b32.xlu0 %v2027_v34, %s1417_s23  ;;  %720 = vrot.lane.b32.xlu1 %v2034_v4, %s1416_s22 }
 0x323   :  { %762 = vrot.lane.b32.xlu0 %v2013_v11, %s1417_s23  ;;  %724 = vrot.lane.b32.xlu1 %v2041_v26, %s1416_s22 }
 0x327   :  { %782 = vrot.lane.b32.xlu0 %v2011_v8, %s1418_s24  ;;  %728 = vrot.lane.b32.xlu1 %v2048_v28, %s1416_s22 }
 0x32b   :  { %786 = vrot.lane.b32.xlu0 %v2020_v17, %s1418_s24  ;;  %732 = vrot.lane.b32.xlu1 %v2054_v7, %s1416_s22 }
 0x32f   :  { %790 = vrot.lane.b32.xlu0 %v2027_v34, %s1418_s24  ;;  %752 = vrot.lane.b32.xlu1 %v2034_v4, %s1417_s23 }
 0x333   :  { %794 = vrot.lane.b32.xlu0 %v2013_v11, %s1418_s24  ;;  %756 = vrot.lane.b32.xlu1 %v2041_v26, %s1417_s23 }
 0x337   :  { %822 = vrot.lane.b32.xlu0 %v2011_v8, %s1419_s25  ;;  %760 = vrot.lane.b32.xlu1 %v2048_v28, %s1417_s23 }
 0x33b   :  { %826 = vrot.lane.b32.xlu0 %v2020_v17, %s1419_s25  ;;  %764 = vrot.lane.b32.xlu1 %v2054_v7, %s1417_s23 }
 0x33f   :  { %830 = vrot.lane.b32.xlu0 %v2027_v34, %s1419_s25  ;;  %784 = vrot.lane.b32.xlu1 %v2034_v4, %s1418_s24 }
 0x343   :  { %834 = vrot.lane.b32.xlu0 %v2013_v11, %s1419_s25  ;;  %788 = vrot.lane.b32.xlu1 %v2041_v26, %s1418_s24 }
 0x347   :  { %854 = vrot.lane.b32.xlu0 %v2011_v8, %s1420_s26  ;;  %792 = vrot.lane.b32.xlu1 %v2048_v28, %s1418_s24 }
 0x34b   :  { %858 = vrot.lane.b32.xlu0 %v2020_v17, %s1420_s26  ;;  %796 = vrot.lane.b32.xlu1 %v2054_v7, %s1418_s24 }
 0x34f   :  { %862 = vrot.lane.b32.xlu0 %v2027_v34, %s1420_s26  ;;  %824 = vrot.lane.b32.xlu1 %v2034_v4, %s1419_s25 }
 0x353   :  { %866 = vrot.lane.b32.xlu0 %v2013_v11, %s1420_s26  ;;  %828 = vrot.lane.b32.xlu1 %v2041_v26, %s1419_s25 }
 0x357   :  { %886 = vrot.lane.b32.xlu0 %v2011_v8, %s1421_s27  ;;  %832 = vrot.lane.b32.xlu1 %v2048_v28, %s1419_s25 }
 0x35b   :  { %890 = vrot.lane.b32.xlu0 %v2020_v17, %s1421_s27  ;;  %836 = vrot.lane.b32.xlu1 %v2054_v7, %s1419_s25 }
 0x35f   :  { %894 = vrot.lane.b32.xlu0 %v2027_v34, %s1421_s27  ;;  %856 = vrot.lane.b32.xlu1 %v2034_v4, %s1420_s26 }
 0x363   :  { %898 = vrot.lane.b32.xlu0 %v2013_v11, %s1421_s27  ;;  %860 = vrot.lane.b32.xlu1 %v2041_v26, %s1420_s26 }
 0x367   :  { %918 = vrot.lane.b32.xlu0 %v2011_v8, %s1422_s28  ;;  %864 = vrot.lane.b32.xlu1 %v2048_v28, %s1420_s26 }
 0x36b   :  { %922 = vrot.lane.b32.xlu0 %v2020_v17, %s1422_s28  ;;  %868 = vrot.lane.b32.xlu1 %v2054_v7, %s1420_s26 }
 0x36f   :  { %926 = vrot.lane.b32.xlu0 %v2027_v34, %s1422_s28  ;;  %888 = vrot.lane.b32.xlu1 %v2034_v4, %s1421_s27 }
 0x373   :  { %930 = vrot.lane.b32.xlu0 %v2013_v11, %s1422_s28  ;;  %892 = vrot.lane.b32.xlu1 %v2041_v26, %s1421_s27 }
 0x375   :  { %v699_v54 = vpop.permute.xlu0 %698  ;;  %v687_v29 = vpop.permute.xlu1 %686 }
 0x377   :  { %896 = vrot.lane.b32.xlu1 %v2048_v28, %s1421_s27 }
 0x379   :  { %v719_v32 = vpop.permute.xlu0 %718  ;;  %v691_v35 = vpop.permute.xlu1 %690 }
 0x37a   :  { %v704_v14 = vsel %vm64_vm1, %v691_v35, %v699_v54  ;;  %v708_v60 = vsel %vm64_vm1, %v699_v54, %v691_v35 }
 0x37b   :  { %900 = vrot.lane.b32.xlu1 %v2054_v7, %s1421_s27  ;;  %v714_v22 = vmul.f32 %v708_v60, %v1652_v20  ;;  %v715_v23 = vmul.f32 %v704_v14, %v1649_v19 }
 0x37d   :  { %v723_v36 = vpop.permute.xlu0 %722  ;;  %v695_v37 = vpop.permute.xlu1 %694 }
 0x37e   :  { %v702_v45 = vsel %vm64_vm1, %v687_v29, %v695_v37  ;;  %v706_v46 = vsel %vm64_vm1, %v695_v37, %v687_v29 }
 0x37f   :  { %920 = vrot.lane.b32.xlu1 %v2034_v4, %s1422_s28  ;;  %v710_v57 = vmul.f32 %v706_v46, %v1652_v20  ;;  %v711_v58 = vmul.f32 %v702_v45, %v1649_v19 }
 0x381   :  { %v727_v40 = vpop.permute.xlu0 %726  ;;  %v689_v6 = vpop.permute.xlu1 %688 }
 0x382   :  { %v734_v35 = vsel %vm108_vm2, %v719_v32, %v727_v40  ;;  %v738_v37 = vsel %vm108_vm2, %v727_v40, %v719_v32 }
 0x383   :  { %924 = vrot.lane.b32.xlu1 %v2041_v26, %s1422_s28  ;;  %v743_v45 = vmul.f32 %v734_v35, %v1690_v51 }
 0x385   :  { %v731_v43 = vpop.permute.xlu0 %730  ;;  %v693_v44 = vpop.permute.xlu1 %692 }
 0x386   :  { %v736_v32 = vsel %vm108_vm2, %v723_v36, %v731_v43  ;;  %v740_v40 = vsel %vm108_vm2, %v731_v43, %v723_v36 }
 0x387   :  { %928 = vrot.lane.b32.xlu1 %v2048_v28, %s1422_s28  ;;  %v746_v14 = vmul.f32 %v740_v40, %v1687_v50  ;;  %v747_v60 = vmul.f32 %v736_v32, %v1690_v51 }
 0x389   :  { %v2167_v48 = vpop.permute.xlu0 %750  ;;  %v697_v53 = vpop.permute.xlu1 %696 }
 0x38a   :  { %v703_v55 = vsel %vm64_vm1, %v689_v6, %v697_v53  ;;  %v707_v56 = vsel %vm64_vm1, %v697_v53, %v689_v6 }
 0x38b   :  { %v712_v15 = vmul.f32 %v707_v56, %v1652_v20  ;;  %v713_v59 = vmul.f32 %v703_v55, %v1649_v19  ;;  %932 = vrot.lane.b32.xlu1 %v2054_v7, %s1422_s28 }
 0x38d   :  { %v1318_v61 = vpack.c.bf16 %v712_v15, %v710_v57  ;;  %v2183_v63 = vpop.permute.xlu0 %754  ;;  %v701_v12 = vpop.permute.xlu1 %700  ;;  %v1316_v33 = vpack.c.bf16 %v713_v59, %v711_v58 }
 0x38e   :  { %v705_v41 = vsel %vm64_vm1, %v693_v44, %v701_v12  ;;  %v709_v1 = vsel %vm64_vm1, %v701_v12, %v693_v44  ;;  %v742_v44 = vmul.f32 %v738_v37, %v1687_v50 }
 0x38f   :  { %v716_v5 = vmul.f32 %v709_v1, %v1652_v20  ;;  %v717_v24 = vmul.f32 %v705_v41, %v1649_v19  ;;  %1317 = vmatprep.subr.bf16.mxu0 %v1316_v33 }
 0x390   :  { %1319 = vmatpush1.bf16.msra.mxu0 %v1318_v61 }
 0x391   :  { %v1354_v3 = vpack.c.bf16 %v716_v5, %v714_v22  ;;  %v759_v25 = vpop.permute.xlu0 %758  ;;  %v721_v47 = vpop.permute.xlu1 %720  ;;  %v1352_v27 = vpack.c.bf16 %v717_v24, %v715_v23 }
 0x392   :  { %v766_v23 = vsel %vm152_vm3, %v2167_v48, %v759_v25 }
 0x393   :  { %1353 = vmatprep.subr.bf16.mxu1 %v1352_v27  ;;  %v775_v27 = vmul.f32 %v766_v23, %v1724_v31  ;;  %v815_v23 = vmul.f32 %v2027_v34, %v1757_v62 }
 0x394   :  { %1355 = vmatpush1.bf16.msra.mxu1 %v1354_v3 }
 0x395   :  { %v763_v54 = vpop.permute.xlu0 %762  ;;  %v725_v29 = vpop.permute.xlu1 %724 }
 0x399   :  { %v2197_v6 = vpop.permute.xlu0 %782  ;;  %v729_v20 = vpop.permute.xlu1 %728 }
 0x39a   :  { %v735_v19 = vsel %vm108_vm2, %v721_v47, %v729_v20  ;;  %v739_v42 = vsel %vm108_vm2, %v729_v20, %v721_v47 }
 0x39b   :  { %v744_v46 = vmul.f32 %v739_v42, %v1687_v50  ;;  %v745_v53 = vmul.f32 %v735_v19, %v1690_v51 }
 0x39d   :  { %v1322_v55 = vpack.c.bf16 %v744_v46, %v742_v44  ;;  %v2211_v56 = vpop.permute.xlu0 %786  ;;  %v733_v57 = vpop.permute.xlu1 %732  ;;  %v1320_v58 = vpack.c.bf16 %v745_v53, %v743_v45 }
 0x39e   :  { %v737_v15 = vsel %vm108_vm2, %v725_v29, %v733_v57  ;;  %v741_v59 = vsel %vm108_vm2, %v733_v57, %v725_v29 }
 0x39f   :  { %v748_v61 = vmul.f32 %v741_v59, %v1687_v50  ;;  %v749_v12 = vmul.f32 %v737_v15, %v1690_v51  ;;  %1321 = vmatprep.subr.bf16.mxu0 %v1320_v58  ;;  %v770_v50 = vsel %vm152_vm3, %v759_v25, %v2167_v48  ;;  %v768_v48 = vsel %vm152_vm3, %v2183_v63, %v763_v54 }
 0x3a0   :  { %1323 = vmatpush1.bf16.msra.mxu0 %v1322_v55  ;;  %v774_v47 = vmul.f32 %v770_v50, %v1721_v30  ;;  %v772_v25 = vsel %vm152_vm3, %v763_v54, %v2183_v63  ;;  %v779_v53 = vmul.f32 %v768_v48, %v1724_v31 }
 0x3a1   :  { %v1358_v36 = vpack.c.bf16 %v748_v61, %v746_v14  ;;  %v791_v43 = vpop.permute.xlu0 %790  ;;  %v753_v33 = vpop.permute.xlu1 %752  ;;  %v1356_v41 = vpack.c.bf16 %v749_v12, %v747_v60  ;;  %v778_v46 = vmul.f32 %v772_v25, %v1721_v30  ;;  %v817_v12 = vmul.f32 %v2048_v28, %v1757_v62 }
 0x3a2   :  { %v798_v59 = vsel %vm196_vm4, %v2197_v6, %v791_v43 }
 0x3a3   :  { %1357 = vmatprep.subr.bf16.mxu1 %v1356_v41 }
 0x3a4   :  { %1359 = vmatpush1.bf16.msra.mxu1 %v1358_v36 }
 0x3a5   :  { %v795_v1 = vpop.permute.xlu0 %794  ;;  %v757_v22 = vpop.permute.xlu1 %756 }
 0x3a9   :  { %v2227_v5 = vpop.permute.xlu0 %822  ;;  %v761_v51 = vpop.permute.xlu1 %760 }
 0x3aa   :  { %v767_v24 = vsel %vm152_vm3, %v753_v33, %v761_v51  ;;  %v771_v3 = vsel %vm152_vm3, %v761_v51, %v753_v33  ;;  %v807_v33 = vmul.f32 %v798_v59, %v1764_v10 }
 0x3ab   :  { %v776_v29 = vmul.f32 %v771_v3, %v1721_v30  ;;  %v777_v35 = vmul.f32 %v767_v24, %v1724_v31  ;;  %v816_v3 = vmul.f32 %v2034_v4, %v1771_v16  ;;  %v814_v4 = vmul.f32 %v2011_v8, %v1771_v16 }
 0x3ad   :  { %v1326_v37 = vpack.c.bf16 %v776_v29, %v774_v47  ;;  %v2243_v20 = vpop.permute.xlu0 %826  ;;  %v765_v19 = vpop.permute.xlu1 %764  ;;  %v1324_v42 = vpack.c.bf16 %v777_v35, %v775_v27  ;;  %v1332_v29 = vpack.c.bf16 %v817_v12, %v815_v23 }
 0x3ae   :  { %v769_v44 = vsel %vm152_vm3, %v757_v22, %v765_v19  ;;  %v773_v45 = vsel %vm152_vm3, %v765_v19, %v757_v22  ;;  %v804_v22 = vsel %vm196_vm4, %v795_v1, %v2211_v56 }
 0x3af   :  { %v780_v32 = vmul.f32 %v773_v45, %v1721_v30  ;;  %v781_v40 = vmul.f32 %v769_v44, %v1724_v31  ;;  %1325 = vmatprep.subr.bf16.mxu0 %v1324_v42  ;;  %v802_v30 = vsel %vm196_vm4, %v791_v43, %v2197_v6  ;;  %v800_v43 = vsel %vm196_vm4, %v2211_v56, %v795_v1 }
 0x3b0   :  { %1327 = vmatpush1.bf16.msra.mxu0 %v1326_v37  ;;  %v806_v36 = vmul.f32 %v802_v30, %v1761_v9  ;;  %v821_v56 = vmul.f32 %v2054_v7, %v1757_v62  ;;  %v810_v34 = vmul.f32 %v804_v22, %v1761_v9  ;;  %v811_v1 = vmul.f32 %v800_v43, %v1764_v10 }
 0x3b1   :  { %v1362_v63 = vpack.c.bf16 %v780_v32, %v778_v46  ;;  %v831_v54 = vpop.permute.xlu0 %830  ;;  %v785_v55 = vpop.permute.xlu1 %784  ;;  %v1360_v57 = vpack.c.bf16 %v781_v40, %v779_v53  ;;  %v819_v7 = vmul.f32 %v2013_v11, %v1757_v62  ;;  %v1334_v42 = vpack.c.bf16 %v816_v3, %v814_v4 }
 0x3b2   :  { %v820_v44 = vmul.f32 %v2041_v26, %v1771_v16  ;;  %v838_v53 = vsel %vm259_vm5, %v2227_v5, %v831_v54  ;;  %v842_v62 = vsel %vm259_vm5, %v831_v54, %v2227_v5 }
 0x3b3   :  { %1361 = vmatprep.subr.bf16.mxu1 %v1360_v57  ;;  %v847_v40 = vmul.f32 %v842_v62, %v1817_v2 }
 0x3b4   :  { %1363 = vmatpush1.bf16.msra.mxu1 %v1362_v63 }
 0x3b5   :  { %v835_v58 = vpop.permute.xlu0 %834  ;;  %v789_v15 = vpop.permute.xlu1 %788 }
 0x3b6   :  { %v840_v5 = vsel %vm259_vm5, %v2243_v20, %v835_v58  ;;  %v844_v54 = vsel %vm259_vm5, %v835_v58, %v2243_v20 }
 0x3b9   :  { %v2259_v14 = vpop.permute.xlu0 %854  ;;  %v793_v31 = vpop.permute.xlu1 %792 }
 0x3ba   :  { %v799_v60 = vsel %vm196_vm4, %v785_v55, %v793_v31  ;;  %v803_v61 = vsel %vm196_vm4, %v793_v31, %v785_v55 }
 0x3bb   :  { %v808_v41 = vmul.f32 %v803_v61, %v1761_v9  ;;  %v809_v6 = vmul.f32 %v799_v60, %v1764_v10  ;;  %v850_v60 = vmul.f32 %v840_v5, %v1814_v0  ;;  %v851_v61 = vmul.f32 %v844_v54, %v1817_v2 }
 0x3bd   :  { %v1330_v28 = vpack.c.bf16 %v808_v41, %v806_v36  ;;  %v2279_v50 = vpop.permute.xlu0 %858  ;;  %v797_v51 = vpop.permute.xlu1 %796  ;;  %v1328_v24 = vpack.c.bf16 %v809_v6, %v807_v33 }
 0x3be   :  { %v801_v47 = vsel %vm196_vm4, %v789_v15, %v797_v51  ;;  %v805_v27 = vsel %vm196_vm4, %v797_v51, %v789_v15 }
 0x3bf   :  { %v812_v35 = vmul.f32 %v805_v27, %v1761_v9  ;;  %v813_v48 = vmul.f32 %v801_v47, %v1764_v10  ;;  %1329 = vmatprep.subr.bf16.mxu0 %v1328_v24  ;;  %v1368_v9 = vpack.c.bf16 %v821_v56, %v819_v7  ;;  %v818_v10 = vmul.f32 %v2020_v17, %v1771_v16 }
 0x3c0   :  { %1331 = vmatpush1.bf16.msra.mxu0 %v1330_v28  ;;  %v846_v17 = vmul.f32 %v838_v53, %v1814_v0 }
 0x3c1   :  { %v1366_v25 = vpack.c.bf16 %v812_v35, %v810_v34  ;;  %1333 = vmatprep.subr.bf16.mxu0 %v1332_v29  ;;  %v825_v37 = vpop.permute.xlu1 %824  ;;  %v1364_v19 = vpack.c.bf16 %v813_v48, %v811_v1  ;;  %v863_v45 = vpop.permute.xlu0 %862  ;;  %v1370_v46 = vpack.c.bf16 %v820_v44, %v818_v10 }
 0x3c2   :  { %v870_v22 = vsel %vm303_vm6, %v2259_v14, %v863_v45  ;;  %v874_v23 = vsel %vm303_vm6, %v863_v45, %v2259_v14 }
 0x3c3   :  { %1365 = vmatprep.subr.bf16.mxu1 %v1364_v19  ;;  %v878_v51 = vmul.f32 %v870_v22, %v1848_v38  ;;  %v879_v24 = vmul.f32 %v874_v23, %v1851_v39 }
 0x3c4   :  { %1335 = vmatpush1.bf16.msra.mxu0 %v1334_v42  ;;  %1367 = vmatpush1.bf16.msra.mxu1 %v1366_v25 }
 0x3c5   :  { %1369 = vmatprep.subr.bf16.mxu1 %v1368_v9  ;;  %v829_v8 = vpop.permute.xlu1 %828  ;;  %v867_v11 = vpop.permute.xlu0 %866 }
 0x3c6   :  { %v872_v14 = vsel %vm303_vm6, %v2279_v50, %v867_v11  ;;  %v876_v29 = vsel %vm303_vm6, %v867_v11, %v2279_v50 }
 0x3c7   :  { %v882_v4 = vmul.f32 %v872_v14, %v1848_v38  ;;  %v883_v25 = vmul.f32 %v876_v29, %v1851_v39 }
 0x3c8   :  { %1371 = vmatpush1.bf16.msra.mxu1 %v1370_v46 }
 0x3c9   :  { %v833_v26 = vpop.permute.xlu1 %832  ;;  %v887_v12 = vpop.permute.xlu0 %886 }
 0x3ca   :  { %v839_v32 = vsel %vm259_vm5, %v825_v37, %v833_v26  ;;  %v843_v16 = vsel %vm259_vm5, %v833_v26, %v825_v37 }
 0x3cb   :  { %v848_v63 = vmul.f32 %v839_v32, %v1814_v0  ;;  %v849_v55 = vmul.f32 %v843_v16, %v1817_v2 }
 0x3cd   :  { %v1338_v57 = vpack.c.bf16 %v848_v63, %v846_v17  ;;  %v837_v15 = vpop.permute.xlu1 %836  ;;  %v1336_v59 = vpack.c.bf16 %v849_v55, %v847_v40  ;;  %v891_v6 = vpop.permute.xlu0 %890 }
 0x3ce   :  { %v841_v30 = vsel %vm259_vm5, %v829_v8, %v837_v15  ;;  %v845_v31 = vsel %vm259_vm5, %v837_v15, %v829_v8 }
 0x3cf   :  { %v852_v36 = vmul.f32 %v841_v30, %v1814_v0  ;;  %v853_v33 = vmul.f32 %v845_v31, %v1817_v2  ;;  %1337 = vmatprep.subr.bf16.mxu0 %v1336_v59 }
 0x3d0   :  { %1339 = vmatpush1.bf16.msra.mxu0 %v1338_v57 }
 0x3d1   :  { %v1374_v20 = vpack.c.bf16 %v852_v36, %v850_v60  ;;  %v857_v58 = vpop.permute.xlu1 %856  ;;  %v1372_v41 = vpack.c.bf16 %v853_v33, %v851_v61  ;;  %v895_v3 = vpop.permute.xlu0 %894 }
 0x3d2   :  { %v902_v10 = vsel %vm347_vm7, %v887_v12, %v895_v3  ;;  %v906_v8 = vsel %vm347_vm7, %v895_v3, %v887_v12 }
 0x3d3   :  { %1373 = vmatprep.subr.bf16.mxu1 %v1372_v41  ;;  %v910_v53 = vmul.f32 %v902_v10, %v1882_v18  ;;  %v911_v62 = vmul.f32 %v906_v8, %v1885_v21 }
 0x3d4   :  { %1375 = vmatpush1.bf16.msra.mxu1 %v1374_v20 }
 0x3d5   :  { %v861_v43 = vpop.permute.xlu1 %860  ;;  %v899_v50 = vpop.permute.xlu0 %898 }
 0x3d6   :  { %v904_v32 = vsel %vm347_vm7, %v891_v6, %v899_v50  ;;  %v908_v16 = vsel %vm347_vm7, %v899_v50, %v891_v6 }
 0x3d7   :  { %v914_v57 = vmul.f32 %v904_v32, %v1882_v18  ;;  %v915_v15 = vmul.f32 %v908_v16, %v1885_v21 }
 0x3d9   :  { %v865_v0 = vpop.permute.xlu1 %864  ;;  %v919_v9 = vpop.permute.xlu0 %918 }
 0x3da   :  { %v871_v2 = vsel %vm303_vm6, %v857_v58, %v865_v0  ;;  %v875_v28 = vsel %vm303_vm6, %v865_v0, %v857_v58 }
 0x3db   :  { %v880_v47 = vmul.f32 %v871_v2, %v1848_v38  ;;  %v881_v27 = vmul.f32 %v875_v28, %v1851_v39 }
 0x3dd   :  { %v1342_v56 = vpack.c.bf16 %v880_v47, %v878_v51  ;;  %v869_v34 = vpop.permute.xlu1 %868  ;;  %v1340_v1 = vpack.c.bf16 %v881_v27, %v879_v24  ;;  %v923_v17 = vpop.permute.xlu0 %922 }
 0x3de   :  { %v873_v35 = vsel %vm303_vm6, %v861_v43, %v869_v34  ;;  %v877_v48 = vsel %vm303_vm6, %v869_v34, %v861_v43  ;;  %v950_v34 = vld [vmem:[%s2529_s5] sm:$0xff] }
 0x3df   :  { %v884_v37 = vmul.f32 %v873_v35, %v1848_v38  ;;  %v885_v19 = vmul.f32 %v877_v48, %v1851_v39  ;;  %1341 = vmatprep.subr.bf16.mxu0 %v1340_v1 }
 0x3e0   :  { %1343 = vmatpush1.bf16.msra.mxu0 %v1342_v56 }
 0x3e1   :  { %v1378_v7 = vpack.c.bf16 %v884_v37, %v882_v4  ;;  %v889_v42 = vpop.permute.xlu1 %888  ;;  %v1376_v44 = vpack.c.bf16 %v885_v19, %v883_v25  ;;  %v927_v12 = vpop.permute.xlu0 %926 }
 0x3e2   :  { %v934_v33 = vsel %vm391_vm8, %v919_v9, %v927_v12  ;;  %v938_v20 = vsel %vm391_vm8, %v927_v12, %v919_v9 }
 0x3e3   :  { %1377 = vmatprep.subr.bf16.mxu1 %v1376_v44  ;;  %v942_v6 = vmul.f32 %v934_v33, %v1916_v49  ;;  %v943_v43 = vmul.f32 %v938_v20, %v1919_v52 }
 0x3e4   :  { %1379 = vmatpush1.bf16.msra.mxu1 %v1378_v7 }
 0x3e5   :  { %v893_v45 = vpop.permute.xlu1 %892  ;;  %v931_v58 = vpop.permute.xlu0 %930 }
 0x3e6   :  { %v936_v0 = vsel %vm391_vm8, %v923_v17, %v931_v58  ;;  %v940_v2 = vsel %vm391_vm8, %v931_v58, %v923_v17 }
 0x3e7   :  { %v946_v27 = vmul.f32 %v936_v0, %v1916_v49  ;;  %v947_v14 = vmul.f32 %v940_v2, %v1919_v52  ;;  %v1166_v2 = vld [vmem:[%s2531_s7] sm:$0xff] }
 0x3e9   :  { %v897_v46 = vpop.permute.xlu1 %896 }
 0x3ea   :  { %v903_v38 = vsel %vm347_vm7, %v889_v42, %v897_v46  ;;  %v907_v39 = vsel %vm347_vm7, %v897_v46, %v889_v42 }
 0x3eb   :  { %v912_v11 = vmul.f32 %v903_v38, %v1882_v18  ;;  %v913_v26 = vmul.f32 %v907_v39, %v1885_v21 }
 0x3ed   :  { %v1346_v40 = vpack.c.bf16 %v912_v11, %v910_v53  ;;  %v901_v63 = vpop.permute.xlu1 %900  ;;  %v1344_v55 = vpack.c.bf16 %v913_v26, %v911_v62 }
 0x3ee   :  { %v905_v5 = vsel %vm347_vm7, %v893_v45, %v901_v63  ;;  %v909_v54 = vsel %vm347_vm7, %v901_v63, %v893_v45 }
 0x3ef   :  { %v916_v59 = vmul.f32 %v905_v5, %v1882_v18  ;;  %v917_v30 = vmul.f32 %v909_v54, %v1885_v21  ;;  %1345 = vmatprep.subr.bf16.mxu0 %v1344_v55 }
 0x3f0   :  { %1347 = vmatpush1.bf16.msra.mxu0 %v1346_v40 }
 0x3f1   :  { %v1382_v31 = vpack.c.bf16 %v916_v59, %v914_v57  ;;  %v921_v60 = vpop.permute.xlu1 %920  ;;  %v1380_v61 = vpack.c.bf16 %v917_v30, %v915_v15 }
 0x3f3   :  { %1381 = vmatprep.subr.bf16.mxu1 %v1380_v61 }
 0x3f4   :  { %1383 = vmatpush1.bf16.msra.mxu1 %v1382_v31 }
 0x3f5   :  { %v925_v36 = vpop.permute.xlu1 %924 }
 0x3f9   :  { %v929_v41 = vpop.permute.xlu1 %928 }
 0x3fa   :  { %v935_v18 = vsel %vm391_vm8, %v921_v60, %v929_v41  ;;  %v939_v21 = vsel %vm391_vm8, %v929_v41, %v921_v60 }
 0x3fb   :  { %v944_v22 = vmul.f32 %v935_v18, %v1916_v49  ;;  %v945_v23 = vmul.f32 %v939_v21, %v1919_v52 }
 0x3fd   :  { %v1350_v28 = vpack.c.bf16 %v944_v22, %v942_v6  ;;  %v933_v51 = vpop.permute.xlu1 %932  ;;  %v1348_v24 = vpack.c.bf16 %v945_v23, %v943_v43  ;;  %v1158_v22 = vld [vmem:[%s2530_s6] sm:$0xff] }
 0x3fe   :  { %v937_v3 = vsel %vm391_vm8, %v925_v36, %v933_v51  ;;  %v941_v47 = vsel %vm391_vm8, %v933_v51, %v925_v36  ;;  %v1159_v51 = vld [vmem:[%s2530_s6 + $0x8] sm:$0xff] }
 0x3ff   :  { %v948_v29 = vmul.f32 %v937_v3, %v1916_v49  ;;  %v949_v56 = vmul.f32 %v941_v47, %v1919_v52  ;;  %1349 = vmatprep.subr.bf16.mxu0 %v1348_v24  ;;  %v952_v49 = vld [vmem:[%s2529_s5 + $0x10] sm:$0xff] }
 0x400   :  { %1351 = vmatpush1.bf16.msra.mxu0 %v1350_v28 }
 0x401   :  { %v1386_v1 = vpack.c.bf16 %v948_v29, %v946_v27  ;;  %v1384_v35 = vpack.c.bf16 %v949_v56, %v947_v14  ;;  %v1167_v27 = vld [vmem:[%s2531_s7 + $0x8] sm:$0xff] }
 0x403   :  { %1025 = vmatmul.mubr.f32.vlgmr.msra.gmra.mrb[4].mxu0 %v950_v34  ;;  %1385 = vmatprep.subr.bf16.mxu1 %v1384_v35 }
 0x404   :  { %1387 = vmatpush1.bf16.msra.mxu1 %v1386_v1  ;;  %1241 = vmatprep.mubr.msk.f32.mxu0 %vm423_vm0, %v953_v13 }
 0x407   :  { %1102 = vmatmul.mubr.f32.vlgmr.msra.gmra.mrb[4].mxu1 %v950_v34  ;;  %1031 = vmatmul.mubr.f32.gmra.mrb[6].mxu0 %v952_v49 }
 0x408   :  { %1243 = vmatprep.mubr.msk.f32.mxu1 %vm423_vm0, %v953_v13 }
 0x40b   :  { %1108 = vmatmul.mubr.f32.gmra.mrb[6].mxu1 %v952_v49 }
 0x4d6   :  { %v2416_v52 = vpop.f32.mrb[4].mxu0 }
 0x4d7   :  { %v1128_v48 = vmul.f32 %v2416_v52, %v2416_v52  ;;  %v2420_v4 = vpop.f32.mrb[5].mxu0 }
 0x4d8   :  { %v1114_v25 = vadd.f32 %v2420_v4, %v2416_v52  ;;  %v1129_v37 = vmul.f32 %v2420_v4, %v2420_v4 }
 0x4da   :  { %1115 = vadd.xlane.f32.xlu0 %v1114_v25  ;;  %v2426_v19 = vpop.f32.mrb[4].mxu1  ;;  %v1136_v50 = vadd.f32 %v1129_v37, %v1128_v48  ;;  %v2428_v7 = vpop.f32.mrb[6].mxu0 }
 0x4db   :  { %v1132_v42 = vmul.f32 %v2426_v19, %v2426_v19  ;;  %v2432_v44 = vpop.f32.mrb[5].mxu1  ;;  %v1130_v45 = vmul.f32 %v2428_v7, %v2428_v7  ;;  %v2436_v9 = vpop.f32.mrb[7].mxu0 }
 0x4dc   :  { %v1120_v10 = vadd.f32 %v2432_v44, %v2426_v19  ;;  %v1133_v8 = vmul.f32 %v2432_v44, %v2432_v44  ;;  %1137 = vadd.xlane.f32.xlu1 %v1136_v50  ;;  %v1117_v46 = vadd.f32 %v2436_v9, %v2428_v7  ;;  %v1131_v38 = vmul.f32 %v2436_v9, %v2436_v9 }
 0x4de   :  { %v1139_v39 = vadd.f32 %v1131_v38, %v1130_v45  ;;  %1121 = vadd.xlane.f32.xlu0 %v1120_v10  ;;  %v2446_v53 = vpop.f32.mrb[6].mxu1  ;;  %v1142_v62 = vadd.f32 %v1133_v8, %v1132_v42  ;;  %v1407_v45 = vld [vmem:[%s2524_s0] sm:$0xff]  ;;  %v1410_v8 = vld [vmem:[%s2524_s0 + $0x28] sm:$0xff] }
 0x4df   :  { %v1134_v11 = vmul.f32 %v2446_v53, %v2446_v53  ;;  %v2450_v26 = vpop.f32.mrb[7].mxu1 }
 0x4e0   :  { %v1123_v32 = vadd.f32 %v2450_v26, %v2446_v53  ;;  %v1135_v16 = vmul.f32 %v2450_v26, %v2450_v26  ;;  %1118 = vadd.xlane.f32.xlu1 %v1117_v46 }
 0x4e2   :  { %v1145_v17 = vadd.f32 %v1135_v16, %v1134_v11  ;;  %1124 = vadd.xlane.f32.xlu0 %v1123_v32 }
 0x4e4   :  { %1143 = vadd.xlane.f32.xlu1 %v1142_v62 }
 0x4e6   :  { %1140 = vadd.xlane.f32.xlu0 %v1139_v39 }
 0x4ea   :  { %1146 = vadd.xlane.f32.xlu0 %v1145_v17 }
 0x567   :  { %v1116_v40 = vpop.xlane.xlu0 %1115 }
 0x569   :  { %v1138_v63 = vpop.xlane.xlu1 %1137 }
 0x56b   :  { %v1122_v55 = vpop.xlane.xlu0 %1121 }
 0x56c   :  { %v1126_v5 = vadd.f32 %v1122_v55, %v1116_v40  ;;  %v1411_v55 = vld [vmem:[%s2524_s0 + $0x10] sm:$0xff] }
 0x56d   :  { %v1119_v54 = vpop.xlane.xlu1 %1118 }
 0x56e   :  { %v1150_v15 = vmul.f32 0.001953125, %v1126_v5 }
 0x56f   :  { %v1125_v57 = vpop.xlane.xlu0 %1124 }
 0x570   :  { %v1127_v30 = vadd.f32 %v1125_v57, %v1119_v54  ;;  %v1154_v61 = vmul.f32 %v1150_v15, %v1150_v15  ;;  %v1412_v54 = vld [vmem:[%s2524_s0 + $0x18] sm:$0xff] }
 0x571   :  { %v1144_v59 = vpop.xlane.xlu1 %1143 }
 0x572   :  { %v1148_v31 = vadd.f32 %v1144_v59, %v1138_v63  ;;  %v1151_v36 = vmul.f32 0.001953125, %v1127_v30  ;;  %v1414_v30 = vld [vmem:[%s2524_s0 + $0x38] sm:$0xff] }
 0x573   :  { %v1141_v60 = vpop.xlane.xlu0 %1140 }
 0x574   :  { %v1152_v12 = vmul.f32 0.001953125, %v1148_v31  ;;  %v1155_v18 = vmul.f32 %v1151_v36, %v1151_v36 }
 0x576   :  { %v1156_v33 = vsub.f32 %v1152_v12, %v1154_v61 }
 0x577   :  { %v1147_v20 = vpop.xlane.xlu0 %1146 }
 0x578   :  { %v1160_v58 = vadd.f32 1e-05, %v1156_v33  ;;  %v1149_v41 = vadd.f32 %v1147_v20, %v1141_v60 }
 0x57a   :  { %1403 = vrsqrt.f32 %v1160_v58  ;;  %v1153_v21 = vmul.f32 0.001953125, %v1149_v41 }
 0x57c   :  { %v1157_v6 = vsub.f32 %v1153_v21, %v1155_v18 }
 0x57e   :  { %v1161_v43 = vadd.f32 1e-05, %v1157_v6 }
 0x580   :  { %1405 = vrsqrt.f32 %v1161_v43 }
 0x584   :  { %v1404_v23 = vpop.eup %1403 }
 0x585   :  { %v1164_v0 = vmul.f32 %v1404_v23, %v1158_v22 }
 0x587   :  { %1174 = vperm.xlu1 %1397, %v1164_v0   ;;  %v1168_v28 = vmul.f32 %v1164_v0, %v1150_v15  ;;  %v1413_v15 = vld [vmem:[%s2524_s0 + $0x30] sm:$0xff] }
 0x589   :  { %v1170_v24 = vsub.f32 %v1166_v2, %v1168_v28 }
 0x58a   :  { %v1406_v3 = vpop.eup %1405 }
 0x58b   :  { %1192 = vperm.xlu1 %1397, %v1170_v24   ;;  %v1165_v47 = vmul.f32 %v1406_v3, %v1159_v51 }
 0x58d   :  { %1179 = vperm.xlu0 %1398, %v1165_v47   ;;  %v1169_v14 = vmul.f32 %v1165_v47, %v1151_v36 }
 0x58f   :  { %v1171_v29 = vsub.f32 %v1167_v27, %v1169_v14 }
 0x591   :  { %1197 = vperm.xlu1 %1397, %v1171_v29  }
 0x606   :  { %v1175_v56 = vpop.permute.xlu1 %1174 }
 0x607   :  { %v1182_v34 = vmul.f32 %v1175_v56, %v2416_v52  ;;  %v1183_v1 = vmul.f32 %v1175_v56, %v2420_v4  ;;  %v1186_v35 = vmul.f32 %v1175_v56, %v2426_v19  ;;  %v1187_v13 = vmul.f32 %v1175_v56, %v2432_v44  ;;  %v1408_v52 = vld [vmem:[%s2524_s0 + $0x8] sm:$0xff]  ;;  %v1409_v19 = vld [vmem:[%s2524_s0 + $0x20] sm:$0xff] }
 0x60a   :  { %v1193_v49 = vpop.permute.xlu1 %1192 }
 0x60b   :  { %v1200_v48 = vadd.f32 %v1193_v49, %v1182_v34  ;;  %v1201_v25 = vadd.f32 %v1193_v49, %v1183_v1  ;;  %v1204_v37 = vadd.f32 %v1193_v49, %v1186_v35  ;;  %v1205_v50 = vadd.f32 %v1193_v49, %v1187_v13 }
 0x60c   :  { %v1180_v42 = vpop.permute.xlu0 %1179 }
 0x60d   :  { %v1208_v10 = vadd.f32 %v1407_v45, %v1200_v48  ;;  %v1209_v4 = vadd.f32 %v1408_v52, %v1201_v25  ;;  %v1212_v44 = vadd.f32 %v1409_v19, %v1204_v37  ;;  %v1213_v46 = vadd.f32 %v1410_v8, %v1205_v50 }
 0x60e   :  { %v1184_v38 = vmul.f32 %v1180_v42, %v2428_v7  ;;  %v1185_v39 = vmul.f32 %v1180_v42, %v2436_v9  ;;  %v1188_v62 = vmul.f32 %v1180_v42, %v2446_v53  ;;  %v1189_v11 = vmul.f32 %v1180_v42, %v2450_v26 }
 0x60f   :  { %v1216_v32 = vmax.f32 %v1208_v10, 0.0  ;;  %v1217_v16 = vmax.f32 %v1209_v4, 0.0  ;;  %v1220_v17 = vmax.f32 %v1212_v44, 0.0  ;;  %v1221_v40 = vmax.f32 %v1213_v46, 0.0 }
 0x610   :  { %v1198_v63 = vpop.permute.xlu1 %1197 }
 0x611   :  { %1224 = vst [vmem:[%s2532_s8] sm:$0xff] %v1216_v32  ;;  %1225 = vst [vmem:[%s2532_s8 + $0x8] sm:$0xff] %v1217_v16  ;;  %v1202_v7 = vadd.f32 %v1198_v63, %v1184_v38  ;;  %v1203_v9 = vadd.f32 %v1198_v63, %v1185_v39  ;;  %v1206_v53 = vadd.f32 %v1198_v63, %v1188_v62 }
 0x612   :  { %1228 = vst [vmem:[%s2532_s8 + $0x20] sm:$0xff] %v1220_v17  ;;  %1229 = vst [vmem:[%s2532_s8 + $0x28] sm:$0xff] %v1221_v40  ;;  %v1207_v26 = vadd.f32 %v1198_v63, %v1189_v11 }
 0x613   :  { %v1210_v5 = vadd.f32 %v1411_v55, %v1202_v7  ;;  %v1211_v57 = vadd.f32 %v1412_v54, %v1203_v9  ;;  %v1214_v59 = vadd.f32 %v1413_v15, %v1206_v53 }
 0x614   :  { %v1215_v31 = vadd.f32 %v1414_v30, %v1207_v26 }
 0x615   :  { %v1218_v60 = vmax.f32 %v1210_v5, 0.0  ;;  %v1219_v61 = vmax.f32 %v1211_v57, 0.0  ;;  %v1222_v12 = vmax.f32 %v1214_v59, 0.0 }
 0x616   :  { %v1223_v36 = vmax.f32 %v1215_v31, 0.0 }
 0x617   :  { %1226 = vst [vmem:[%s2532_s8 + $0x10] sm:$0xff] %v1218_v60  ;;  %1227 = vst [vmem:[%s2532_s8 + $0x18] sm:$0xff] %v1219_v61 }
 0x618   :  { %1230 = vst [vmem:[%s2532_s8 + $0x30] sm:$0xff] %v1222_v12  ;;  %1231 = vst [vmem:[%s2532_s8 + $0x38] sm:$0xff] %v1223_v36 }

</bundles_post_ra>
